<compile_context>
chip_gen: v6e
topology: v6e:2x2x1
jax: 0.10.0
libtpu: 0.0.40
codegen_flags: <defaults>
</compile_context>

<pallas_src>
import functools

import jax
import jax.numpy as jnp
from jax.experimental import pallas as pl
from jax.experimental.pallas import tpu as pltpu

_INV_SQRT2 = 0.7071067811865476


def _gelu_exact(x):
    # nn.GELU() default is the exact (erf-based) GELU; keep the math in f32.
    return 0.5 * x * (1.0 + jax.lax.erf(x * _INV_SQRT2))


def _hidden_tile(x_ref, w1_ref, b1_ref):
    """gelu(x @ W1_tile + b1_tile), computed and returned in f32."""
    h = jnp.dot(x_ref[...], w1_ref[...], preferred_element_type=jnp.float32)
    h = h + b1_ref[...].astype(jnp.float32)  # (1, block_h) broadcast over rows
    return _gelu_exact(h)


def mlp_kernel(x_ref, w1_ref, b1_ref, w2_ref, b2_ref, o_ref, acc_ref, hid_ref=None):
    """One (block_m, block_n, block_h) grid step.

    acc(i, j) += gelu(x(i) @ W1[:, h] + b1[h]) @ W2[h, j];  out written at last h.
    When out_feat is tiled (hid_ref is a VMEM scratch), the hidden activation for
    the current M tile is computed once at j == 0 and cached; later N tiles reuse it.
    """
    j = pl.program_id(1)
    h = pl.program_id(2)

    @pl.when(h == 0)
    def _():
        acc_ref[...] = jnp.zeros_like(acc_ref)

    if hid_ref is None:
        # Single output tile: compute the hidden tile directly on every step.
        hid = _hidden_tile(x_ref, w1_ref, b1_ref).astype(w2_ref.dtype)
    else:
        # out_feat is tiled: compute + cache the hidden tile once per M tile.
        @pl.when(j == 0)
        def _():
            hid_ref[h] = _hidden_tile(x_ref, w1_ref, b1_ref).astype(hid_ref.dtype)

        hid = hid_ref[h]

    # Second matmul: [block_m, block_h] @ [block_h, block_n], f32 accumulate.
    acc_ref[...] += jnp.dot(hid, w2_ref[...], preferred_element_type=jnp.float32)

    @pl.when(h == pl.num_programs(2) - 1)
    def _():
        y = acc_ref[...] + b2_ref[...].astype(jnp.float32)
        # TODO(synk): nn.Dropout is identity in eval mode; training-mode dropout
        # (pltpu.prng_seed + pltpu.stateful_bernoulli mask * 1/(1-p)) not applied.
        o_ref[...] = y.astype(o_ref.dtype)


def _tpu_vmem_and_cores():
    """Physical VMEM bytes and a (proxy) TensorCore count for this generation."""
    try:
        cap = int(pltpu.get_tpu_info().vmem_capacity_bytes)
    except Exception:  # no TPU info available at trace time -> be conservative (v7x)
        cap = 64 * 1024 * 1024
    # 64 MiB VMEM is the v7x signature (2 TCs/chip); 128 MiB parts are single-TC.
    cores = 2 if cap <= (64 << 20) else 1
    return cap, cores


def _auto_blocks(m, in_feat, hidden, out_feat, mxu_bytes, budget, prefer_two_m_tiles):
    """Pick (block_m, block_h, block_n) that divide the dims and fit the VMEM budget."""

    def candidates(dim, sizes):
        # Full dim first (always divides), then lane/sublane-aligned divisors, descending.
        return [dim] + [s for s in sizes if s < dim and dim % s == 0]

    m_cands = candidates(m, (1024, 512, 384, 256, 128, 64, 32, 16, 8))
    h_cands = candidates(hidden, (2048, 1024, 512, 256, 128))  # prefer 256-multiples
    n_cands = candidates(out_feat, (4096, 2048, 1024, 512, 256, 128))

    # On 2-core parts (v7x) make sure axis 0 has >=2 tiles so megacore can shard it.
    if prefer_two_m_tiles and len(m_cands) > 1:
        m_cands = m_cands[1:]

    def footprint(bm, bh, bn):
        multi_n = bn < out_feat
        fp = 2 * mxu_bytes * (bm * in_feat + in_feat * bh + bh * bn + bm * bn + bh + bn)
        fp += 4 * bm * bn                    # resident f32 accumulator scratch
        if multi_n:
            fp += mxu_bytes * bm * hidden    # hidden-activation VMEM cache
        return fp

    best = None
    for bn in n_cands:                       # widest (lane-dense) output tile first
        found = None
        for bm in m_cands:                   # tallest M tile first (weight reuse)
            for bh in h_cands:               # widest hidden tile first (MXU width)
                if footprint(bm, bh, bn) <= budget:
                    found = (bm, bh, bn)
                    break
            if found is not None:
                break
        if found is None:
            continue
        # Only accept a narrower output tile if it buys a substantially taller M tile.
        if best is None or found[0] > 2 * best[0]:
            best = found
        if best[0] >= min(m, 256):
            break
    if best is None:                         # nothing fits the budget; smallest tiles
        best = (m_cands[-1], h_cands[-1], n_cands[-1])
    return best


@functools.partial(jax.jit, static_argnames=("block_m", "block_h", "block_n", "mxu_dtype"))
def mlp_forward(x, w1, b1, w2, b2, *, block_m=None, block_h=None, block_n=None,
                mxu_dtype=jnp.bfloat16):
    """x: [M, in_feat]; w1: [in_feat, hidden]; b1: [1, hidden]; w2: [hidden, out]; b2: [1, out]."""
    m, in_feat = x.shape
    hidden = w1.shape[1]
    out_feat = w2.shape[1]
    out_dtype = x.dtype

    # Run the MXU in bf16 (f32 accumulation stays): f32 operands cost ~3x MXU
    # throughput and 2x weight DMA on v5e/v6e/v7x.  Pass mxu_dtype=None to disable.
    if mxu_dtype is not None:
        x = x.astype(mxu_dtype)
        w1 = w1.astype(mxu_dtype)
        w2 = w2.astype(mxu_dtype)
    mxu_bytes = jnp.dtype(x.dtype).itemsize

    vmem_cap, cores = _tpu_vmem_and_cores()
    vmem_limit = int(vmem_cap * 0.7)      # ~45 MiB on v7x, ~90 MiB on v5e/v6e
    tile_budget = int(vmem_limit * 0.85)  # headroom for Mosaic internal scratch

    if block_m is None or block_h is None or block_n is None:
        abm, abh, abn = _auto_blocks(m, in_feat, hidden, out_feat, mxu_bytes,
                                     tile_budget,
                                     prefer_two_m_tiles=(cores > 1 and m >= 16))
        block_m = abm if block_m is None else block_m
        block_h = abh if block_h is None else block_h
        block_n = abn if block_n is None else block_n

    assert m % block_m == 0, (m, block_m)
    assert hidden % block_h == 0, (hidden, block_h)
    assert out_feat % block_n == 0, (out_feat, block_n)

    grid = (m // block_m, out_feat // block_n, hidden // block_h)
    multi_n = grid[1] > 1

    scratch_shapes = [pltpu.VMEM((block_m, block_n), jnp.float32)]
    if multi_n:
        # Cache gelu(x @ W1) for the whole M tile so it is not recomputed per N tile.
        scratch_shapes.append(pltpu.VMEM((hidden // block_h, block_m, block_h), x.dtype))

    cost = pl.CostEstimate(
        flops=2 * m * (in_feat * hidden + hidden * out_feat),
        transcendentals=m * hidden,  # one erf per hidden activation
        bytes_accessed=int(
            x.size * mxu_bytes
            + m * out_feat * jnp.dtype(out_dtype).itemsize
            + grid[0] * grid[1] * w1.size * mxu_bytes  # W1 re-streamed per (M, N) tile
            + grid[0] * w2.size * mxu_bytes            # W2 re-streamed per M tile
            + (b1.size + b2.size) * jnp.dtype(b1.dtype).itemsize
        ),
    )

    return pl.pallas_call(
        mlp_kernel,
        out_shape=jax.ShapeDtypeStruct((m, out_feat), out_dtype),
        grid_spec=pltpu.PrefetchScalarGridSpec(
            num_scalar_prefetch=0,
            grid=grid,
            in_specs=[
                pl.BlockSpec((block_m, in_feat), lambda i, j, h: (i, 0)),    # x row tile
                pl.BlockSpec((in_feat, block_h), lambda i, j, h: (0, h)),    # W1 column tile
                pl.BlockSpec((1, block_h), lambda i, j, h: (0, h)),          # b1 tile
                pl.BlockSpec((block_h, block_n), lambda i, j, h: (h, j)),    # W2 tile
                pl.BlockSpec((1, block_n), lambda i, j, h: (0, j)),          # b2 tile
            ],
            out_specs=pl.BlockSpec((block_m, block_n), lambda i, j, h: (i, j)),
            scratch_shapes=scratch_shapes,
        ),
        compiler_params=pltpu.CompilerParams(
            # axis 0 is megacore-shardable; axes 1 (out tiles, reuses the hidden
            # cache) and 2 (reduction) must stay sequential.
            dimension_semantics=("parallel", "arbitrary", "arbitrary"),
            vmem_limit_bytes=vmem_limit,
        ),
        cost_estimate=cost,
    )(x, w1, b1, w2, b2)


def init_params(key, in_feat, hidden_feat, out_feat, dtype=jnp.float32):
    """Deterministic init mirroring nn.Linear's U(-1/sqrt(fan_in), 1/sqrt(fan_in))."""
    k1, k2, k3, k4 = jax.random.split(key, 4)
    bound1 = 1.0 / jnp.sqrt(in_feat)
    bound2 = 1.0 / jnp.sqrt(hidden_feat)
    # Stored as [in, out] (i.e. PyTorch weight transposed) so the kernel does x @ W.
    w1 = jax.random.uniform(k1, (in_feat, hidden_feat), dtype, -bound1, bound1)
    b1 = jax.random.uniform(k2, (1, hidden_feat), dtype, -bound1, bound1)
    w2 = jax.random.uniform(k3, (hidden_feat, out_feat), dtype, -bound2, bound2)
    b2 = jax.random.uniform(k4, (1, out_feat), dtype, -bound2, bound2)
    return w1, b1, w2, b2


if __name__ == "__main__":
    # Lane/sublane-friendly but small shapes (feature dims multiples of 128).
    in_feat, hidden_feat, out_feat = 128, 512, 256
    batch = 512
    drop_prob = 0.1  # unused at inference (dropout == identity)

    key = jax.random.PRNGKey(0)
    kx, kp = jax.random.split(key)
    x = jax.random.normal(kx, (batch, in_feat), jnp.float32)
    w1, b1, w2, b2 = init_params(kp, in_feat, hidden_feat, out_feat)

    # Pure-JAX reference using the same mixed precision (bf16 MXU operands, f32 accum).
    xb, w1b, w2b = (a.astype(jnp.bfloat16) for a in (x, w1, w2))
    href = jnp.dot(xb, w1b, preferred_element_type=jnp.float32) + b1
    href = 0.5 * href * (1.0 + jax.lax.erf(href * _INV_SQRT2))
    ref = jnp.dot(href.astype(jnp.bfloat16), w2b, preferred_element_type=jnp.float32) + b2

    # (1) Explicit tiles exercising all three grid axes (2 x 2 x 2), including the
    #     out_feat-tiled path with the hidden-activation VMEM cache.
    out1 = mlp_forward(x, w1, b1, w2, b2, block_m=256, block_h=256, block_n=128)
    # (2) Generation-aware auto tiles: single N tile, streamed hidden axis.
    out2 = mlp_forward(x, w1, b1, w2, b2)
    out1, out2 = jax.block_until_ready((out1, out2))

    for out in (out1, out2):
        assert out.shape == (batch, out_feat)
        err = float(jnp.max(jnp.abs(out - ref)))
        assert jnp.allclose(out, ref, atol=5e-3, rtol=5e-3), f"mismatch vs reference: {err}"

    print("KERNEL_OK")
</pallas_src>

<mosaic_0001>
module attributes {stable_mosaic.version = 11 : i64} {
  func.func @mlp_kernel(%arg0: i32, %arg1: i32, %arg2: i32, %arg3: memref<256x128xbf16, #tpu.memory_space<vmem>>, %arg4: memref<128x256xbf16, #tpu.memory_space<vmem>>, %arg5: memref<1x256xf32, #tpu.memory_space<vmem>>, %arg6: memref<256x128xbf16, #tpu.memory_space<vmem>>, %arg7: memref<1x128xf32, #tpu.memory_space<vmem>>, %arg8: memref<256x128xf32, #tpu.memory_space<vmem>>, %arg9: memref<256x128xf32, #tpu.memory_space<vmem>>, %arg10: memref<2x256x256xbf16, #tpu.memory_space<vmem>>) attributes {dimension_semantics = [#tpu.dimension_semantics<parallel>, #tpu.dimension_semantics<arbitrary>, #tpu.dimension_semantics<arbitrary>], iteration_bounds = array<i64: 2, 2, 2>, scalar_prefetch = 0 : i64, scratch_operands = 2 : i64, tpu.core_type = #tpu.core_type<tc>, window_params = [{transform_indices = @transform_0, window_bounds = array<i64: 256, 128>}, {transform_indices = @transform_1, window_bounds = array<i64: 128, 256>}, {transform_indices = @transform_2, window_bounds = array<i64: 1, 256>}, {transform_indices = @transform_3, window_bounds = array<i64: 256, 128>}, {transform_indices = @transform_4, window_bounds = array<i64: 1, 128>}, {transform_indices = @transform_5, window_bounds = array<i64: 256, 128>}]} {
    %c0_i32 = arith.constant 0 : i32
    %0 = arith.cmpi eq, %arg2, %c0_i32 : i32
    %1 = arith.extui %0 : i1 to i32
    %c0_i32_0 = arith.constant 0 : i32
    %2 = arith.cmpi ne, %1, %c0_i32_0 : i32
    scf.if %2 {
      %cst_11 = arith.constant 0.000000e+00 : f32
      %17 = vector.broadcast %cst_11 : f32 to vector<256x128xf32>
      %c0_12 = arith.constant 0 : index
      %c0_13 = arith.constant 0 : index
      %18 = vector.load %arg9[%c0_12, %c0_13] : memref<256x128xf32, #tpu.memory_space<vmem>>, vector<256x128xf32>
      tpu.vector_store %arg9[%c0_12, %c0_13], %17 {strides = array<i32>} : memref<256x128xf32, #tpu.memory_space<vmem>>, vector<256x128xf32>,
    } else {
    }
    %c0_i32_1 = arith.constant 0 : i32
    %3 = arith.cmpi eq, %arg1, %c0_i32_1 : i32
    %4 = arith.extui %3 : i1 to i32
    %c0_i32_2 = arith.constant 0 : i32
    %5 = arith.cmpi ne, %4, %c0_i32_2 : i32
    scf.if %5 {
      %c0_11 = arith.constant 0 : index
      %c0_12 = arith.constant 0 : index
      %17 = vector.load %arg3[%c0_11, %c0_12] : memref<256x128xbf16, #tpu.memory_space<vmem>>, vector<256x128xbf16>
      %c0_13 = arith.constant 0 : index
      %c0_14 = arith.constant 0 : index
      %18 = vector.load %arg4[%c0_13, %c0_14] : memref<128x256xbf16, #tpu.memory_space<vmem>>, vector<128x256xbf16>
      %cst_15 = arith.constant dense<0.000000e+00> : vector<256x256xf32>
      %19 = tpu.matmul %17, %18, %cst_15 {dimension_numbers = #tpu.dot_dimension_numbers<[1], [0], [0], [1], [0, 0, 1, 1], [], []>} : vector<256x128xbf16>, vector<128x256xbf16>, vector<256x256xf32> -> vector<256x256xf32>
      %c0_16 = arith.constant 0 : index
      %c0_17 = arith.constant 0 : index
      %20 = vector.load %arg5[%c0_16, %c0_17] : memref<1x256xf32, #tpu.memory_space<vmem>>, vector<1x256xf32>
      %21 = vector.broadcast %20 : vector<1x256xf32> to vector<256x256xf32>
      %22 = arith.addf %19, %21 : vector<256x256xf32>
      %cst_18 = arith.constant 5.000000e-01 : f32
      %23 = vector.broadcast %cst_18 : f32 to vector<256x256xf32>
      %24 = arith.mulf %23, %22 : vector<256x256xf32>
      %cst_19 = arith.constant 0.707106769 : f32
      %25 = vector.broadcast %cst_19 : f32 to vector<256x256xf32>
      %26 = arith.mulf %22, %25 : vector<256x256xf32>
      %27 = math.erf %26 : vector<256x256xf32>
      %cst_20 = arith.constant 1.000000e+00 : f32
      %28 = vector.broadcast %cst_20 : f32 to vector<256x256xf32>
      %29 = arith.addf %28, %27 : vector<256x256xf32>
      %30 = arith.mulf %24, %29 : vector<256x256xf32>
      %31 = arith.truncf %30 : vector<256x256xf32> to vector<256x256xbf16>
      %32 = arith.index_cast %arg2 : i32 to index
      %c0_21 = arith.constant 0 : index
      %c0_22 = arith.constant 0 : index
      %33 = vector.load %arg10[%32, %c0_21, %c0_22] : memref<2x256x256xbf16, #tpu.memory_space<vmem>>, vector<1x256x256xbf16>
      %34 = vector.shape_cast %33 : vector<1x256x256xbf16> to vector<256x256xbf16>
      %35 = vector.shape_cast %31 : vector<256x256xbf16> to vector<1x256x256xbf16>
      tpu.vector_store %arg10[%32, %c0_21, %c0_22], %35 {strides = array<i32>} : memref<2x256x256xbf16, #tpu.memory_space<vmem>>, vector<1x256x256xbf16>,
    } else {
    }
    %6 = arith.index_cast %arg2 : i32 to index
    %c0 = arith.constant 0 : index
    %c0_3 = arith.constant 0 : index
    %7 = vector.load %arg10[%6, %c0, %c0_3] : memref<2x256x256xbf16, #tpu.memory_space<vmem>>, vector<1x256x256xbf16>
    %8 = vector.shape_cast %7 : vector<1x256x256xbf16> to vector<256x256xbf16>
    %c0_4 = arith.constant 0 : index
    %c0_5 = arith.constant 0 : index
    %9 = vector.load %arg9[%c0_4, %c0_5] : memref<256x128xf32, #tpu.memory_space<vmem>>, vector<256x128xf32>
    %c0_6 = arith.constant 0 : index
    %c0_7 = arith.constant 0 : index
    %10 = vector.load %arg6[%c0_6, %c0_7] : memref<256x128xbf16, #tpu.memory_space<vmem>>, vector<256x128xbf16>
    %cst = arith.constant dense<0.000000e+00> : vector<256x128xf32>
    %11 = tpu.matmul %8, %10, %cst {dimension_numbers = #tpu.dot_dimension_numbers<[1], [0], [0], [1], [0, 0, 1, 1], [], []>} : vector<256x256xbf16>, vector<256x128xbf16>, vector<256x128xf32> -> vector<256x128xf32>
    %12 = arith.addf %9, %11 : vector<256x128xf32>
    %c0_8 = arith.constant 0 : index
    %c0_9 = arith.constant 0 : index
    %13 = vector.load %arg9[%c0_8, %c0_9] : memref<256x128xf32, #tpu.memory_space<vmem>>, vector<256x128xf32>
    tpu.vector_store %arg9[%c0_8, %c0_9], %12 {strides = array<i32>} : memref<256x128xf32, #tpu.memory_space<vmem>>, vector<256x128xf32>,
    %c1_i32 = arith.constant 1 : i32
    %14 = arith.cmpi eq, %arg2, %c1_i32 : i32
    %15 = arith.extui %14 : i1 to i32
    %c0_i32_10 = arith.constant 0 : i32
    %16 = arith.cmpi ne, %15, %c0_i32_10 : i32
    scf.if %16 {
      %c0_11 = arith.constant 0 : index
      %c0_12 = arith.constant 0 : index
      %17 = vector.load %arg9[%c0_11, %c0_12] : memref<256x128xf32, #tpu.memory_space<vmem>>, vector<256x128xf32>
      %c0_13 = arith.constant 0 : index
      %c0_14 = arith.constant 0 : index
      %18 = vector.load %arg7[%c0_13, %c0_14] : memref<1x128xf32, #tpu.memory_space<vmem>>, vector<1x128xf32>
      %19 = vector.broadcast %18 : vector<1x128xf32> to vector<256x128xf32>
      %20 = arith.addf %17, %19 : vector<256x128xf32>
      %c0_15 = arith.constant 0 : index
      %c0_16 = arith.constant 0 : index
      %21 = vector.load %arg8[%c0_15, %c0_16] : memref<256x128xf32, #tpu.memory_space<vmem>>, vector<256x128xf32>
      tpu.vector_store %arg8[%c0_15, %c0_16], %20 {strides = array<i32>} : memref<256x128xf32, #tpu.memory_space<vmem>>, vector<256x128xf32>,
    } else {
    }
    return
  }
  func.func @transform_0(%arg0: i32, %arg1: i32, %arg2: i32) -> (i32, i32) {
    %c0_i32 = arith.constant 0 : i32
    %c0_i32_0 = arith.constant 0 : i32
    return %arg0, %c0_i32 : i32, i32
  }
  func.func @transform_1(%arg0: i32, %arg1: i32, %arg2: i32) -> (i32, i32) {
    %c0_i32 = arith.constant 0 : i32
    %c0_i32_0 = arith.constant 0 : i32
    return %c0_i32, %arg2 : i32, i32
  }
  func.func @transform_2(%arg0: i32, %arg1: i32, %arg2: i32) -> (i32, i32) {
    %c0_i32 = arith.constant 0 : i32
    %c0_i32_0 = arith.constant 0 : i32
    return %c0_i32, %arg2 : i32, i32
  }
  func.func @transform_3(%arg0: i32, %arg1: i32, %arg2: i32) -> (i32, i32) {
    %c0_i32 = arith.constant 0 : i32
    return %arg2, %arg1 : i32, i32
  }
  func.func @transform_4(%arg0: i32, %arg1: i32, %arg2: i32) -> (i32, i32) {
    %c0_i32 = arith.constant 0 : i32
    %c0_i32_0 = arith.constant 0 : i32
    return %c0_i32, %arg1 : i32, i32
  }
  func.func @transform_5(%arg0: i32, %arg1: i32, %arg2: i32) -> (i32, i32) {
    %c0_i32 = arith.constant 0 : i32
    return %arg0, %arg1 : i32, i32
  }
}

</mosaic_0001>

<bundles_post_ra>
// kernel: mlp_forward.1
= control target key start
LH: loop header
LB: loop body
LE: loop exit
PB: predicated region body
PF: predicated region fallthrough
CT: control target
= control target key end

     0   :  { %s4205_s0 = inlined_call_operand.vmem [shape: bf16[512,128], index: 0, kind: input, shape index: {}]   ;;  %s4206_s1 = inlined_call_operand.vmem [shape: bf16[128,512], index: 1, kind: input, shape index: {}]   ;;  %s4207_s2 = inlined_call_operand.vmem [shape: f32[1,512], index: 2, kind: input, shape index: {}]   ;;  %s4208_s3 = inlined_call_operand.vmem [shape: bf16[512,256], index: 3, kind: input, shape index: {}]   ;;  %s4209_s4 = inlined_call_operand.vmem [shape: f32[1,256], index: 4, kind: input, shape index: {}]   ;;  %s4210_s5 = inlined_call_operand.hbm [shape: f32[512,256], index: 5, kind: output, shape index: {}]  }
   0x1   :  { %4220 = sst [smem:[#allocation18_spill]] %s4206_s1 }
   0x2   :  { %4221 = sst [smem:[#allocation19_spill]] %s4207_s2 }
   0x3   :  { %4222 = sst [smem:[#allocation20_spill]] %s4208_s3 }
   0x4   :  { %4223 = sst [smem:[#allocation21_spill]] %s4209_s4 }
   0x5   :  { %4224 = sst [smem:[#allocation22_spill]] %s4210_s5 }
   0x6   :  { %10 = vsyncpa [#allocation7], 0 }
   0x7   :  { %12 = vsyncpa [#allocation7 + $0x1], 0  ;;  %s3310_s18 = smov 0   ;;  %s3312_s19 = smov 0  }
   0x8   :  { %s3314_s20 = smov 0   ;;  %s3316_s21 = smov 0  }
   0x9   :  { %s3318_s22 = smov 0   ;;  %s3320_s23 = smov 0  }
   0xa   :  { %s3322_s24 = smov 0   ;;  %s3324_s25 = smov 0  }
   0xb   :  { %s3326_s26 = smov 0   ;;  %s3328_s27 = smov 0  }
   0xc   :  { %s3330_s28 = smov 0   ;;  %s3332_s29 = smov 0  }
   0xd   :  { %s3334_s30 = smov 0   ;;  %s3336_s6 = smov 0  }
   0xe LB: > { %4225 = sst [smem:[#allocation9_spill]] %s3244_s24  ;;  %s30_s9 = sadd.s32 1, %s3260_s28  ;;  %s3272_s6 = sphi %s3336_s6, %s18_s6   ;;  %s3268_s30 = sphi %s3334_s30, %s4257_s30   ;;  %s3264_s29 = sphi %s3332_s29, %s4256_s29   ;;  %s3260_s28 = sphi %s3330_s28, %s4255_s28   ;;  %s3256_s27 = sphi %s3328_s27, %s4254_s27   ;;  %s3252_s26 = sphi %s3326_s26, %s4253_s26   ;;  %s3248_s25 = sphi %s3324_s25, %s4252_s25   ;;  %s3244_s24 = sphi %s3322_s24, %s4251_s24   ;;  %s3240_s23 = sphi %s3320_s23, %s4250_s23   ;;  %s3236_s22 = sphi %s3318_s22, %s4263_s22   ;;  %s3232_s21 = sphi %s3316_s21, %s4262_s21   ;;  %s3228_s20 = sphi %s3314_s20, %s4261_s20   ;;  %s3224_s19 = sphi %s3312_s19, %s4260_s19   ;;  %s3220_s18 = sphi %s3310_s18, %s4259_s18  }
   0xf   : > { %4226 = sst [smem:[#allocation10_spill]] %s3260_s28  ;;  %s33_s10 = sadd.s32 1, %s3264_s29 }
  0x10   : > { %4227 = sst [smem:[#allocation11_spill]] %s3264_s29  ;;  %p31_p0 = scmp.ge.s32.totalorder %s30_s9, 2 }
  0x11   : > { %4228 = sst [smem:[#allocation12_spill]] %s3268_s30  ;;  %s37_s11 = sadd.s32 1, %s3268_s30 }
  0x12   : > { %s70_s12 = sadd.s32 1, %s3244_s24  ;;  %p77_p1 = scmp.ne.s32.totalorder %s3244_s24, %s3240_s23 }
  0x13   : > { %s4265_s9 = smov (%p31_p0, %s30_s9), 0  ;;  %s4267_s10 = smov (!%p31_p0, %s33_s10), %s3264_s29 }
  0x14   : > { %4229 = sst [smem:[#allocation13_spill]] %s4265_s9  ;;  %s67_s13 = ssub.s32 %s3260_s28, %s4265_s9 }
  0x15   : > { %p78_p2 = scmp.eq.s32.totalorder %s3272_s6, 0  ;;  %p35_p3 = scmp.ge.s32.totalorder %s4267_s10, 2 }
  0x16   : > { %p68_p4 = scmp.eq.s32.totalorder %s67_s13, 0  ;;  %s124_s15 = sadd.s32 1, %s3236_s22 }
  0x17   : > { %p3396_p5 = por %p78_p2, %p77_p1  ;;  %s4269_s10 = smov (%p35_p3, %s4267_s10), 0 }
  0x18   : > { %4231 = sst [smem:[#allocation14_spill]] %s4269_s10  ;;  %s4271_s11 = smov (!%p35_p3, %s37_s11), %s3268_s30 }
  0x19   : > { %s3405_s16 = scalar_select %p68_p4, %s3244_s24, %s70_s12  }
  0x1a   : > { %p39_p6 = scmp.ge.s32.totalorder %s4271_s11, 2  ;;  %s120_s17 = ssub.s32 %s3264_s29, %s4269_s10 }
  0x1b   : > { %4232 = sst [smem:[#allocation15_spill]] %s3405_s16  ;;  %s121_s8 = sor.u32 %s120_s17, %s67_s13 }
  0x1c   : > { %p131_p7 = scmp.ne.s32.totalorder %s3236_s22, %s3232_s21  ;;  %s4273_s11 = smov (%p39_p6, %s4271_s11), 0 }
  0x1d   : > { %4233 = sst [smem:[#allocation16_spill]] %s4273_s11  ;;  %p122_p8 = scmp.eq.s32.totalorder %s121_s8, 0 }
  0x1e   : > { %p3415_p9 = por %p131_p7, %p78_p2  ;;  %s173_s9 = ssub.s32 %s3268_s30, %s4273_s11 }
  0x1f   : > { %s178_s5 = sadd.s32 1, %s3228_s20  ;;  %s175_s12 = sor.u32 %s173_s9, %s120_s17 }
  0x20   : > { %s3423_s4 = scalar_select %p122_p8, %s3236_s22, %s124_s15  }
  0x21   : > { %p188_p10 = scmp.ne.s32.totalorder %s3228_s20, %s3224_s19  ;;  %p176_p11 = scmp.eq.s32.totalorder %s175_s12, 0 }
  0x22   : > { %4235 = sst [smem:[#allocation17_spill]] %s3423_s4  ;;  %s4236_s16 = sadd.s32 4294967295, %s3272_s6  }
  0x23   : > { %p189_p12 = scmp.eq.s32.totalorder %s4236_s16, 7  ;;  %p194_p13 = scmp.ne.s32.totalorder %s3224_s19, %s3220_s18 }
  0x24   : > { %s4237_s13 = sadd.s32 4294967294, %s3272_s6   ;;  %p2454_p3 = scmp.ge.s32.totalorder %s3272_s6, 8 }
  0x25   : > { %p195_p0 = scmp.eq.s32.totalorder %s4237_s13, 7  ;;  %p3436_p1 = por %p189_p12, %p188_p10 }
  0x26   : > { %s3434_s10 = scalar_select %p176_p11, %s3228_s20, %s178_s5  }
  0x27   : > { %p3440_p2 = por %p195_p0, %p194_p13  ;;  %211 = sbr.rel (%p2454_p3) target bundleno = 93 (0x5d), region = 16 }
  0x2c   : > { %223 = sbr.rel (!%p3396_p5) target bundleno = 62 (0x3e), region = 24  ;;  %s225_s9 = sand.u32 (%p3396_p5), 1, %s3244_s24  }
  0x2d   : > { %s2595_s15 = sshll.u32 (%p3396_p5), %s3260_s28, 3  ;;  %s2455_s5 = sshll.u32 (%p3396_p5), %s225_s9, 7 }
  0x2e   : > { %s4240_s1 = sld [smem:[#allocation18_spill]] (%p3396_p5)  ;;  %s227_s14 = scalar_lea.vmem (%p3396_p5), [#allocation4], %s2455_s5 }
  0x34   : > { %s3452_s12 = scalar_lea.vmem %s4240_s1, %s2595_s15 }
  0x35   : > { %v289_v0 = vld [vmem:[%s3452_s12] sm:$0xff]  ;;  %v291_v1 = vld [vmem:[%s3452_s12 + $0x10] sm:$0xff] }
  0x36   : > { %v293_v2 = vld [vmem:[%s3452_s12 + $0x20] sm:$0xff]  ;;  %290 = vst [vmem:[%s227_s14] sm:$0xff] %v289_v0  ;;  %292 = vst [vmem:[%s227_s14 + $0x8] sm:$0xff] %v291_v1  ;;  %v295_v3 = vld [vmem:[%s3452_s12 + $0x30] sm:$0xff] }
  0x37   : > { %294 = vst [vmem:[%s227_s14 + $0x10] sm:$0xff] %v293_v2  ;;  %v297_v4 = vld [vmem:[%s3452_s12 + $0x40] sm:$0xff]  ;;  %v299_v5 = vld [vmem:[%s3452_s12 + $0x50] sm:$0xff]  ;;  %296 = vst [vmem:[%s227_s14 + $0x18] sm:$0xff] %v295_v3 }
  0x38   : > { %298 = vst [vmem:[%s227_s14 + $0x20] sm:$0xff] %v297_v4  ;;  %300 = vst [vmem:[%s227_s14 + $0x28] sm:$0xff] %v299_v5  ;;  %v301_v6 = vld [vmem:[%s3452_s12 + $0x60] sm:$0xff]  ;;  %v303_v7 = vld [vmem:[%s3452_s12 + $0x70] sm:$0xff] }
  0x39   : > { %v305_v8 = vld [vmem:[%s3452_s12 + $0x80] sm:$0xff]  ;;  %302 = vst [vmem:[%s227_s14 + $0x30] sm:$0xff] %v301_v6  ;;  %304 = vst [vmem:[%s227_s14 + $0x38] sm:$0xff] %v303_v7  ;;  %v307_v9 = vld [vmem:[%s3452_s12 + $0x90] sm:$0xff] }
  0x3a   : > { %306 = vst [vmem:[%s227_s14 + $0x40] sm:$0xff] %v305_v8  ;;  %v309_v10 = vld [vmem:[%s3452_s12 + $0xa0] sm:$0xff]  ;;  %v311_v11 = vld [vmem:[%s3452_s12 + $0xb0] sm:$0xff]  ;;  %308 = vst [vmem:[%s227_s14 + $0x48] sm:$0xff] %v307_v9 }
  0x3b   : > { %310 = vst [vmem:[%s227_s14 + $0x50] sm:$0xff] %v309_v10  ;;  %312 = vst [vmem:[%s227_s14 + $0x58] sm:$0xff] %v311_v11  ;;  %v313_v12 = vld [vmem:[%s3452_s12 + $0xc0] sm:$0xff]  ;;  %v315_v13 = vld [vmem:[%s3452_s12 + $0xd0] sm:$0xff] }
  0x3c   : > { %v317_v14 = vld [vmem:[%s3452_s12 + $0xe0] sm:$0xff]  ;;  %314 = vst [vmem:[%s227_s14 + $0x60] sm:$0xff] %v313_v12  ;;  %316 = vst [vmem:[%s227_s14 + $0x68] sm:$0xff] %v315_v13  ;;  %v319_v15 = vld [vmem:[%s3452_s12 + $0xf0] sm:$0xff] }
  0x3d   : > { %318 = vst [vmem:[%s227_s14 + $0x70] sm:$0xff] %v317_v14  ;;  %320 = vst [vmem:[%s227_s14 + $0x78] sm:$0xff] %v319_v15 }
  0x3e PF: > { %334 = sbr.rel (!%p3415_p9) target bundleno = 93 (0x5d), region = 66  ;;  %s336_s13 = sand.u32 (%p3415_p9), 1, %s3236_s22  }
  0x3f   : > { %s2596_s9 = sshll.u32 (%p3415_p9), %s3260_s28, 6  ;;  %s2458_s15 = sshll.u32 (%p3415_p9), %s336_s13, 7 }
  0x40   : > { %s341_s5 = sadd.s32 (%p3415_p9), %s3264_s29, %s2596_s9  ;;  %s4241_s3 = sld [smem:[#allocation20_spill]] (%p3415_p9) }
  0x41   : > { %s2461_s16 = sshll.u32 (%p3415_p9), %s341_s5, 2  ;;  %s3483_s7 = scalar_lea.vmem (%p3415_p9), [#allocation5], %s2458_s15 }
  0x46   : > { %s3478_s11 = scalar_lea.vmem %s4241_s3, %s2461_s16 }
  0x47   : > { %v360_v16 = vld [vmem:[%s3478_s11] sm:$0xf]  ;;  %v362_v17 = vld [vmem:[%s3478_s11 + $0x8] sm:$0xf]  ;;  %v364_v18 = vld [vmem:[%s3478_s11 + $0x10] sm:$0xf] }
  0x48   : > { %361 = vst [vmem:[%s3483_s7] sm:$0xf] %v360_v16  ;;  %363 = vst [vmem:[%s3483_s7 + $0x4] sm:$0xf] %v362_v17  ;;  %v366_v19 = vld [vmem:[%s3478_s11 + $0x18] sm:$0xf] }
  0x49   : > { %365 = vst [vmem:[%s3483_s7 + $0x8] sm:$0xf] %v364_v18  ;;  %v368_v20 = vld [vmem:[%s3478_s11 + $0x20] sm:$0xf]  ;;  %v370_v21 = vld [vmem:[%s3478_s11 + $0x28] sm:$0xf] }
  0x4a   : > { %367 = vst [vmem:[%s3483_s7 + $0xc] sm:$0xf] %v366_v19  ;;  %369 = vst [vmem:[%s3483_s7 + $0x10] sm:$0xf] %v368_v20  ;;  %v372_v22 = vld [vmem:[%s3478_s11 + $0x30] sm:$0xf] }
  0x4b   : > { %371 = vst [vmem:[%s3483_s7 + $0x14] sm:$0xf] %v370_v21  ;;  %v374_v23 = vld [vmem:[%s3478_s11 + $0x38] sm:$0xf]  ;;  %v376_v24 = vld [vmem:[%s3478_s11 + $0x40] sm:$0xf] }
  0x4c   : > { %373 = vst [vmem:[%s3483_s7 + $0x18] sm:$0xf] %v372_v22  ;;  %375 = vst [vmem:[%s3483_s7 + $0x1c] sm:$0xf] %v374_v23  ;;  %v378_v25 = vld [vmem:[%s3478_s11 + $0x48] sm:$0xf] }
  0x4d   : > { %377 = vst [vmem:[%s3483_s7 + $0x20] sm:$0xf] %v376_v24  ;;  %v380_v26 = vld [vmem:[%s3478_s11 + $0x50] sm:$0xf]  ;;  %v382_v27 = vld [vmem:[%s3478_s11 + $0x58] sm:$0xf] }
  0x4e   : > { %379 = vst [vmem:[%s3483_s7 + $0x24] sm:$0xf] %v378_v25  ;;  %381 = vst [vmem:[%s3483_s7 + $0x28] sm:$0xf] %v380_v26  ;;  %v384_v28 = vld [vmem:[%s3478_s11 + $0x60] sm:$0xf] }
  0x4f   : > { %383 = vst [vmem:[%s3483_s7 + $0x2c] sm:$0xf] %v382_v27  ;;  %v386_v29 = vld [vmem:[%s3478_s11 + $0x68] sm:$0xf]  ;;  %v388_v30 = vld [vmem:[%s3478_s11 + $0x70] sm:$0xf] }
  0x50   : > { %385 = vst [vmem:[%s3483_s7 + $0x30] sm:$0xf] %v384_v28  ;;  %387 = vst [vmem:[%s3483_s7 + $0x34] sm:$0xf] %v386_v29  ;;  %v390_v31 = vld [vmem:[%s3478_s11 + $0x78] sm:$0xf] }
  0x51   : > { %389 = vst [vmem:[%s3483_s7 + $0x38] sm:$0xf] %v388_v30  ;;  %v392_v32 = vld [vmem:[%s3478_s11 + $0x80] sm:$0xf]  ;;  %v394_v33 = vld [vmem:[%s3478_s11 + $0x88] sm:$0xf] }
  0x52   : > { %391 = vst [vmem:[%s3483_s7 + $0x3c] sm:$0xf] %v390_v31  ;;  %393 = vst [vmem:[%s3483_s7 + $0x40] sm:$0xf] %v392_v32  ;;  %v396_v34 = vld [vmem:[%s3478_s11 + $0x90] sm:$0xf] }
  0x53   : > { %395 = vst [vmem:[%s3483_s7 + $0x44] sm:$0xf] %v394_v33  ;;  %v398_v35 = vld [vmem:[%s3478_s11 + $0x98] sm:$0xf]  ;;  %v400_v36 = vld [vmem:[%s3478_s11 + $0xa0] sm:$0xf] }
  0x54   : > { %397 = vst [vmem:[%s3483_s7 + $0x48] sm:$0xf] %v396_v34  ;;  %399 = vst [vmem:[%s3483_s7 + $0x4c] sm:$0xf] %v398_v35  ;;  %v402_v37 = vld [vmem:[%s3478_s11 + $0xa8] sm:$0xf] }
  0x55   : > { %401 = vst [vmem:[%s3483_s7 + $0x50] sm:$0xf] %v400_v36  ;;  %v404_v38 = vld [vmem:[%s3478_s11 + $0xb0] sm:$0xf]  ;;  %v406_v39 = vld [vmem:[%s3478_s11 + $0xb8] sm:$0xf] }
  0x56   : > { %403 = vst [vmem:[%s3483_s7 + $0x54] sm:$0xf] %v402_v37  ;;  %405 = vst [vmem:[%s3483_s7 + $0x58] sm:$0xf] %v404_v38  ;;  %v408_v40 = vld [vmem:[%s3478_s11 + $0xc0] sm:$0xf] }
  0x57   : > { %407 = vst [vmem:[%s3483_s7 + $0x5c] sm:$0xf] %v406_v39  ;;  %v410_v41 = vld [vmem:[%s3478_s11 + $0xc8] sm:$0xf]  ;;  %v412_v42 = vld [vmem:[%s3478_s11 + $0xd0] sm:$0xf] }
  0x58   : > { %409 = vst [vmem:[%s3483_s7 + $0x60] sm:$0xf] %v408_v40  ;;  %411 = vst [vmem:[%s3483_s7 + $0x64] sm:$0xf] %v410_v41  ;;  %v414_v43 = vld [vmem:[%s3478_s11 + $0xd8] sm:$0xf] }
  0x59   : > { %413 = vst [vmem:[%s3483_s7 + $0x68] sm:$0xf] %v412_v42  ;;  %v416_v44 = vld [vmem:[%s3478_s11 + $0xe0] sm:$0xf]  ;;  %v418_v45 = vld [vmem:[%s3478_s11 + $0xe8] sm:$0xf] }
  0x5a   : > { %415 = vst [vmem:[%s3483_s7 + $0x6c] sm:$0xf] %v414_v43  ;;  %417 = vst [vmem:[%s3483_s7 + $0x70] sm:$0xf] %v416_v44  ;;  %v420_v46 = vld [vmem:[%s3478_s11 + $0xf0] sm:$0xf] }
  0x5b   : > { %419 = vst [vmem:[%s3483_s7 + $0x74] sm:$0xf] %v418_v45  ;;  %v422_v47 = vld [vmem:[%s3478_s11 + $0xf8] sm:$0xf]  ;;  %421 = vst [vmem:[%s3483_s7 + $0x78] sm:$0xf] %v420_v46 }
  0x5c   : > { %423 = vst [vmem:[%s3483_s7 + $0x7c] sm:$0xf] %v422_v47 }
  0x5d PF: > { %p2462_p4 = scmp.ge.s32.totalorder %s3272_s6, 1  ;;  %p516_p5 = scmp.lt.s32.totalorder %s3272_s6, 9 }
  0x5f   : > { %p517_p6 = pnand %p2462_p4, %p516_p5 }
  0x60   : > { %s523_s1 = sand.u32 (!%p517_p6), 1, %s3240_s23   ;;  %s530_s11 = sand.u32 (!%p517_p6), 1, %s3232_s21  }
  0x61   : > { %520 = sbr.rel (%p517_p6) target bundleno = 823 (0x337), region = 111  ;;  %s2463_s12 = sshll.u32 (!%p517_p6), %s523_s1, 7 }
  0x62   : > { %s2464_s14 = sshll.u32 (!%p517_p6), %s530_s11, 7  ;;  %s4215_s13 = sand.u32 (!%p517_p6), 1, %s3224_s19  }
  0x63   : > { %s2466_s9 = sshll.u32 (!%p517_p6), %s3256_s27, 5  ;;  %s2465_s15 = sshll.u32 (!%p517_p6), %s4215_s13, 8 }
  0x64   : > { %p574_p7 = scmp.lt.s32.totalorder (!%p517_p6), %s2466_s9, 63  ;;  %s2468_s5 = sshll.u32 (!%p517_p6), %s3248_s25, 1 }
  0x65   : > { %p581_p8 = scmp.lt.s32.totalorder (!%p517_p6), %s2468_s5, 3  ;;  %p586_p9 = scmp.lt.s32.totalorder (!%p517_p6), %s3252_s26, 1 }
  0x66   : > { %s4275_s9 = smov (!%p574_p7, %s2466_s9), 63  ;;  %s4242_s11 = sld [smem:[#allocation19_spill]] }
  0x67   : > { %s2467_s16 = sshll.u32 %s4275_s9, 2  ;;  %s4277_s5 = smov (!%p581_p8, %s2468_s5), 3 }
  0x68   : > { %s3559_s3 = scalar_lea.vmem %s4205_s0, %s2467_s16  ;;  %s4243_s28 = sld [smem:[#allocation21_spill]] }
  0x69   : > { %s3564_s21 = scalar_select %p586_p9, %s3252_s26, 1 }
  0x6a   : > { %s3574_s9 = scalar_lea.vmem [#allocation4], %s2463_s12  ;;  %s3576_s4 = scalar_lea.vmem [#allocation5], %s2464_s14 }
  0x6b   : > { %s3578_s16 = scalar_lea.vmem [#allocation6], %s2465_s15  ;;  %p2469_p10 = scmp.ne.s32.totalorder %s3248_s25, 0 }
  0x6c   : > { %s583_s13 = scalar_lea.vmem %s4242_s11, %s4277_s5 }
  0x6d   : > { %594 = sbr.rel (%p2469_p10) target bundleno = 131 (0x83), region = 123 }
  0x6e   : > { %s588_s24 = scalar_lea.vmem %s4243_s28, %s3564_s21 }
  0x72   : > { %v3274_v48 = vmov 0.0  }
  0x73   : > { %595 = vst [vmem:[#allocation2 + $0xb0] sm:$0xff] %v3274_v48  ;;  %596 = vst [vmem:[#allocation2] sm:$0xff] %v3274_v48 }
  0x74   : > { %597 = vst [vmem:[#allocation2 + $0xd8] sm:$0xff] %v3274_v48  ;;  %598 = vst [vmem:[#allocation2 + $0x18] sm:$0xff] %v3274_v48 }
  0x75   : > { %599 = vst [vmem:[#allocation2 + $0x50] sm:$0xff] %v3274_v48  ;;  %600 = vst [vmem:[#allocation2 + $0x68] sm:$0xff] %v3274_v48 }
  0x76   : > { %601 = vst [vmem:[#allocation2 + $0x30] sm:$0xff] %v3274_v48  ;;  %602 = vst [vmem:[#allocation2 + $0x48] sm:$0xff] %v3274_v48 }
  0x77   : > { %603 = vst [vmem:[#allocation2 + $0x80] sm:$0xff] %v3274_v48  ;;  %604 = vst [vmem:[#allocation2 + $0x88] sm:$0xff] %v3274_v48 }
  0x78   : > { %605 = vst [vmem:[#allocation2 + $0xe8] sm:$0xff] %v3274_v48  ;;  %606 = vst [vmem:[#allocation2 + $0xb8] sm:$0xff] %v3274_v48 }
  0x79   : > { %607 = vst [vmem:[#allocation2 + $0x60] sm:$0xff] %v3274_v48  ;;  %608 = vst [vmem:[#allocation2 + $0xf0] sm:$0xff] %v3274_v48 }
  0x7a   : > { %609 = vst [vmem:[#allocation2 + $0x8] sm:$0xff] %v3274_v48  ;;  %610 = vst [vmem:[#allocation2 + $0x78] sm:$0xff] %v3274_v48 }
  0x7b   : > { %611 = vst [vmem:[#allocation2 + $0x38] sm:$0xff] %v3274_v48  ;;  %612 = vst [vmem:[#allocation2 + $0x58] sm:$0xff] %v3274_v48 }
  0x7c   : > { %613 = vst [vmem:[#allocation2 + $0x40] sm:$0xff] %v3274_v48  ;;  %614 = vst [vmem:[#allocation2 + $0xc8] sm:$0xff] %v3274_v48 }
  0x7d   : > { %615 = vst [vmem:[#allocation2 + $0xe0] sm:$0xff] %v3274_v48  ;;  %616 = vst [vmem:[#allocation2 + $0x90] sm:$0xff] %v3274_v48 }
  0x7e   : > { %617 = vst [vmem:[#allocation2 + $0x70] sm:$0xff] %v3274_v48  ;;  %618 = vst [vmem:[#allocation2 + $0xc0] sm:$0xff] %v3274_v48 }
  0x7f   : > { %619 = vst [vmem:[#allocation2 + $0xa8] sm:$0xff] %v3274_v48  ;;  %620 = vst [vmem:[#allocation2 + $0xd0] sm:$0xff] %v3274_v48 }
  0x80   : > { %621 = vst [vmem:[#allocation2 + $0x10] sm:$0xff] %v3274_v48  ;;  %622 = vst [vmem:[#allocation2 + $0x28] sm:$0xff] %v3274_v48 }
  0x81   : > { %623 = vst [vmem:[#allocation2 + $0xa0] sm:$0xff] %v3274_v48  ;;  %624 = vst [vmem:[#allocation2 + $0xf8] sm:$0xff] %v3274_v48 }
  0x82   : > { %625 = vst [vmem:[#allocation2 + $0x20] sm:$0xff] %v3274_v48  ;;  %626 = vst [vmem:[#allocation2 + $0x98] sm:$0xff] %v3274_v48 }
  0x83 PF: > { %p2470_p11 = scmp.ne.s32.totalorder %s3252_s26, 0 }
  0x85   : > { %630 = sbr.rel (%p2470_p11) target bundleno = 483 (0x1e3), region = 127 }
  0x8a   : > { %v2900_v49 = vld [vmem:[%s3574_s9 + $0x74] ss:$8 sps:$4 sm:$0xff]   ;;  %v2902_v50 = vld [vmem:[%s3574_s9 + $0x70] ss:$8 sps:$4 sm:$0xff]   ;;  %v3275_v51 = vmov 0   ;;  %v2924_v2 = vld [vmem:[%s3559_s3] sm:$0xff]   ;;  %v681_v18 = vlaneseq }
  0x8b   : > { %899 = vmatprep.mubr.bf16.mxu0 %v3275_v51  ;;  %979 = vmatprep.mubr.bf16.mxu1 %v3275_v51  ;;  %v2903_v52 = vld [vmem:[%s3574_s9 + $0x64] ss:$8 sps:$4 sm:$0xff]   ;;  %v2905_v53 = vld [vmem:[%s3574_s9 + $0x60] ss:$8 sps:$4 sm:$0xff]   ;;  %v2906_v54 = vld [vmem:[%s3574_s9 + $0x54] ss:$8 sps:$4 sm:$0xff]  }
  0x8c   : > { %867 = vmatprep.subr.bf16.mxu0 %v2900_v49  ;;  %2744 = vmatprep.subr.bf16.mxu1 %v2900_v49  ;;  %v2908_v55 = vld [vmem:[%s3574_s9 + $0x50] ss:$8 sps:$4 sm:$0xff]   ;;  %v2909_v56 = vld [vmem:[%s3574_s9 + $0x44] ss:$8 sps:$4 sm:$0xff]   ;;  %v2911_v57 = vld [vmem:[%s3574_s9 + $0x40] ss:$8 sps:$4 sm:$0xff]  }
  0x8d   : > { %868 = vmatpush1.bf16.msra.mxu0 %v2902_v50  ;;  %2752 = vmatpush1.bf16.msra.mxu1 %v2902_v50  ;;  %v2912_v58 = vld [vmem:[%s3574_s9 + $0x34] ss:$8 sps:$4 sm:$0xff]   ;;  %v2914_v59 = vld [vmem:[%s3574_s9 + $0x30] ss:$8 sps:$4 sm:$0xff]   ;;  %v2915_v60 = vld [vmem:[%s3574_s9 + $0x24] ss:$8 sps:$4 sm:$0xff]  }
  0x8e   : > { %869 = vmatprep.subr.bf16.mxu0 %v2903_v52  ;;  %2745 = vmatprep.subr.bf16.mxu1 %v2903_v52  ;;  %v2917_v61 = vld [vmem:[%s3574_s9 + $0x20] ss:$8 sps:$4 sm:$0xff]   ;;  %v2918_v62 = vld [vmem:[%s3574_s9 + $0x14] ss:$8 sps:$4 sm:$0xff]   ;;  %v2920_v63 = vld [vmem:[%s3574_s9 + $0x10] ss:$8 sps:$4 sm:$0xff]  }
  0x8f   : > { %v2921_v0 = vld [vmem:[%s3574_s9 + $0x4] ss:$8 sps:$4 sm:$0xff]   ;;  %v2923_v1 = vld [vmem:[%s3574_s9] ss:$8 sps:$4 sm:$0xff]   ;;  %v2928_v6 = vld [vmem:[%s3559_s3 + $0x10] sm:$0xff]   ;;  %v682_v19 = vshrl.u32 %v681_v18, 7 }
  0x90   : > { %v2925_v3 = vld [vmem:[%s3559_s3 + $0x40] sm:$0xff]   ;;  %v2926_v4 = vld [vmem:[%s3559_s3 + $0x8] sm:$0xff]   ;;  %v2929_v7 = vld [vmem:[%s3559_s3 + $0x50] sm:$0xff]  }
  0x91   : > { %870 = vmatpush1.bf16.msra.mxu0 %v2905_v53  ;;  %2753 = vmatpush1.bf16.msra.mxu1 %v2905_v53  ;;  %v2927_v5 = vld [vmem:[%s3559_s3 + $0x48] sm:$0xff]   ;;  %v2930_v8 = vld [vmem:[%s3559_s3 + $0x18] sm:$0xff]   ;;  %v2932_v10 = vld [vmem:[%s3559_s3 + $0x20] sm:$0xff]   ;;  %v683_v20 = vsub.s32 0, %v682_v19  ;;  %v687_v22 = vsub.s32 1, %v682_v19 }
  0x92   : > { %871 = vmatprep.subr.bf16.mxu0 %v2906_v54  ;;  %2746 = vmatprep.subr.bf16.mxu1 %v2906_v54  ;;  %v2931_v9 = vld [vmem:[%s3559_s3 + $0x58] sm:$0xff]   ;;  %v2933_v11 = vld [vmem:[%s3559_s3 + $0x60] sm:$0xff]   ;;  %v2934_v12 = vld [vmem:[%s3559_s3 + $0x28] sm:$0xff]  }
  0x93   : > { %v2935_v13 = vld [vmem:[%s3559_s3 + $0x68] sm:$0xff]   ;;  %v2936_v14 = vld [vmem:[%s3559_s3 + $0x30] sm:$0xff]   ;;  %v2938_v16 = vld [vmem:[%s3559_s3 + $0x38] sm:$0xff]  }
  0x94   : > { %v2937_v15 = vld [vmem:[%s3559_s3 + $0x70] sm:$0xff]   ;;  %v2939_v17 = vld [vmem:[%s3559_s3 + $0x78] sm:$0xff]   ;;  %v679_v21 = vld [vmem:[%s583_s13] sm:$0x3]  ;;  %s2629_s3 = sshll.u32 %s3248_s25, 8 }
  0x95   : > { %872 = vmatpush1.bf16.msra.mxu0 %v2908_v55  ;;  %2754 = vmatpush1.bf16.msra.mxu1 %v2908_v55  ;;  %v3635_v23 = vrot.slane %v679_v21, %v683_v20  ;;  %v3637_v26 = vrot.slane %v679_v21, %v687_v22  ;;  %s3709_s12 = scalar_lea.vmem [#allocation3], %s2629_s3 }
  0x96   : > { %873 = vmatprep.subr.bf16.mxu0 %v2909_v56  ;;  %2747 = vmatprep.subr.bf16.mxu1 %v2909_v56 }
  0x99   : > { %874 = vmatpush1.bf16.msra.mxu0 %v2911_v57  ;;  %2755 = vmatpush1.bf16.msra.mxu1 %v2911_v57 }
  0x9a   : > { %875 = vmatprep.subr.bf16.mxu0 %v2912_v58  ;;  %2748 = vmatprep.subr.bf16.mxu1 %v2912_v58 }
  0x9d   : > { %876 = vmatpush1.bf16.msra.mxu0 %v2914_v59  ;;  %2756 = vmatpush1.bf16.msra.mxu1 %v2914_v59 }
  0x9e   : > { %877 = vmatprep.subr.bf16.mxu0 %v2915_v60  ;;  %2749 = vmatprep.subr.bf16.mxu1 %v2915_v60 }
  0xa1   : > { %878 = vmatpush1.bf16.msra.mxu0 %v2917_v61  ;;  %2757 = vmatpush1.bf16.msra.mxu1 %v2917_v61 }
  0xa2   : > { %879 = vmatprep.subr.bf16.mxu0 %v2918_v62  ;;  %2750 = vmatprep.subr.bf16.mxu1 %v2918_v62 }
  0xa5   : > { %880 = vmatpush1.bf16.msra.mxu0 %v2920_v63  ;;  %2758 = vmatpush1.bf16.msra.mxu1 %v2920_v63 }
  0xa6   : > { %881 = vmatprep.subr.bf16.mxu0 %v2921_v0  ;;  %2751 = vmatprep.subr.bf16.mxu1 %v2921_v0 }
  0xa9   : > { %882 = vmatpush1.bf16.msra.mxu0 %v2923_v1  ;;  %2759 = vmatpush1.bf16.msra.mxu1 %v2923_v1 }
  0xac   : > { %900 = vmatmul.mubr.bf16.vlgmr.msra.gmra.mxu0 %v2924_v2  ;;  %980 = vmatmul.mubr.bf16.vlgmr.msra.gmra.mxu1 %v2925_v3 }
  0xad   : > { %909 = vmatprep.mubr.bf16.mxu0 %v3275_v51  ;;  %989 = vmatprep.mubr.bf16.mxu1 %v3275_v51 }
  0xb4   : > { %910 = vmatmul.mubr.bf16.gmra.mxu0 %v2926_v4  ;;  %990 = vmatmul.mubr.bf16.gmra.mxu1 %v2927_v5 }
  0xb5   : > { %919 = vmatprep.mubr.bf16.mxu0 %v3275_v51  ;;  %999 = vmatprep.mubr.bf16.mxu1 %v3275_v51 }
  0xbc   : > { %920 = vmatmul.mubr.bf16.gmra.mxu0 %v2928_v6  ;;  %1000 = vmatmul.mubr.bf16.gmra.mxu1 %v2929_v7 }
  0xbd   : > { %929 = vmatprep.mubr.bf16.mxu0 %v3275_v51  ;;  %1009 = vmatprep.mubr.bf16.mxu1 %v3275_v51 }
  0xc4   : > { %930 = vmatmul.mubr.bf16.gmra.mxu0 %v2930_v8  ;;  %1010 = vmatmul.mubr.bf16.gmra.mxu1 %v2931_v9 }
  0xc5   : > { %939 = vmatprep.mubr.bf16.mxu0 %v3275_v51  ;;  %1019 = vmatprep.mubr.bf16.mxu1 %v3275_v51 }
  0xcc   : > { %940 = vmatmul.mubr.bf16.gmra.mxu0 %v2932_v10  ;;  %1020 = vmatmul.mubr.bf16.gmra.mxu1 %v2933_v11 }
  0xcd   : > { %949 = vmatprep.mubr.bf16.mxu0 %v3275_v51  ;;  %1029 = vmatprep.mubr.bf16.mxu1 %v3275_v51 }
  0xd4   : > { %950 = vmatmul.mubr.bf16.gmra.mxu0 %v2934_v12  ;;  %1030 = vmatmul.mubr.bf16.gmra.mxu1 %v2935_v13 }
  0xd5   : > { %959 = vmatprep.mubr.bf16.mxu0 %v3275_v51  ;;  %1039 = vmatprep.mubr.bf16.mxu1 %v3275_v51 }
  0xdc   : > { %960 = vmatmul.mubr.bf16.gmra.mxu0 %v2936_v14  ;;  %1040 = vmatmul.mubr.bf16.gmra.mxu1 %v2937_v15 }
  0xdd   : > { %969 = vmatprep.mubr.bf16.mxu0 %v3275_v51  ;;  %1049 = vmatprep.mubr.bf16.mxu1 %v3275_v51 }
  0xe4   : > { %970 = vmatmul.mubr.bf16.gmra.mxu0 %v2938_v16  ;;  %1050 = vmatmul.mubr.bf16.gmra.mxu1 %v2939_v17 }
 0x16c   : > { %v901_v24 = vpop.f32.mrf.mxu0  ;;  %v981_v25 = vpop.f32.mrf.mxu1 }
 0x16d   : > { %v902_v27 = vadd.f32 %v901_v24, %v3635_v23  ;;  %v982_v28 = vadd.f32 %v981_v25, %v3635_v23 }
 0x16e   : > { %v903_v29 = vpop.f32.mrf.mxu0  ;;  %v983_v30 = vpop.f32.mrf.mxu1 }
 0x16f   : > { %v1124_v31 = vmul.f32 0.70710677, %v902_v27  ;;  %v1156_v32 = vmul.f32 0.70710677, %v982_v28  ;;  %v904_v33 = vadd.f32 %v903_v29, %v3637_v26  ;;  %v984_v34 = vadd.f32 %v983_v30, %v3637_v26 }
 0x170   : > { %v905_v35 = vpop.f32.mrf.mxu0  ;;  %v985_v36 = vpop.f32.mrf.mxu1  ;;  %v1060_v2 = vmul.f32 0.5, %v902_v27  ;;  %v1092_v4 = vmul.f32 0.5, %v982_v28 }
 0x171   : > { %2940 = verf.f32 %v1124_v31  ;;  %v906_v37 = vadd.f32 %v905_v35, %v3635_v23  ;;  %v986_v38 = vadd.f32 %v985_v36, %v3635_v23  ;;  %v1125_v39 = vmul.f32 0.70710677, %v904_v33 }
 0x172   : > { %2942 = verf.f32 %v1156_v32  ;;  %v907_v40 = vpop.f32.mrf.mxu0  ;;  %v987_v41 = vpop.f32.mrf.mxu1  ;;  %v1157_v42 = vmul.f32 0.70710677, %v984_v34  ;;  %v1061_v13 = vmul.f32 0.5, %v904_v33  ;;  %v1093_v14 = vmul.f32 0.5, %v984_v34 }
 0x173   : > { %v1126_v43 = vmul.f32 0.70710677, %v906_v37  ;;  %2944 = verf.f32 %v1125_v39  ;;  %v1158_v44 = vmul.f32 0.70710677, %v986_v38  ;;  %v908_v45 = vadd.f32 %v907_v40, %v3637_v26 }
 0x174   : > { %v988_v46 = vadd.f32 %v987_v41, %v3637_v26  ;;  %v911_v47 = vpop.f32.mrf.mxu0  ;;  %v991_v48 = vpop.f32.mrf.mxu1  ;;  %2946 = verf.f32 %v1157_v42  ;;  %v1062_v20 = vmul.f32 0.5, %v906_v37  ;;  %v1094_v24 = vmul.f32 0.5, %v986_v38 }
 0x175   : > { %v912_v49 = vadd.f32 %v911_v47, %v3635_v23  ;;  %v992_v50 = vadd.f32 %v991_v48, %v3635_v23  ;;  %2948 = verf.f32 %v1126_v43  ;;  %v1127_v51 = vmul.f32 0.70710677, %v908_v45 }
 0x176   : > { %v913_v52 = vpop.f32.mrf.mxu0  ;;  %v993_v53 = vpop.f32.mrf.mxu1  ;;  %2950 = verf.f32 %v1158_v44  ;;  %v1159_v54 = vmul.f32 0.70710677, %v988_v46  ;;  %v1063_v25 = vmul.f32 0.5, %v908_v45  ;;  %v1095_v31 = vmul.f32 0.5, %v988_v46 }
 0x177   : > { %v1128_v55 = vmul.f32 0.70710677, %v912_v49  ;;  %2952 = verf.f32 %v1127_v51  ;;  %v1160_v56 = vmul.f32 0.70710677, %v992_v50  ;;  %v3650_v57 = vadd.f32 %v913_v52, %v3637_v26 }
 0x178   : > { %v915_v58 = vpop.f32.mrf.mxu0  ;;  %v995_v59 = vpop.f32.mrf.mxu1  ;;  %2954 = verf.f32 %v1159_v54  ;;  %v3653_v60 = vadd.f32 %v993_v53, %v3637_v26  ;;  %v3679_v32 = vmul.f32 0.5, %v912_v49  ;;  %v3683_v36 = vmul.f32 0.5, %v992_v50 }
 0x179   : > { %v3656_v61 = vadd.f32 %v915_v58, %v3635_v23  ;;  %v3659_v62 = vadd.f32 %v995_v59, %v3635_v23  ;;  %2956 = verf.f32 %v1128_v55  ;;  %v1129_v63 = vmul.f32 0.70710677, %v3650_v57 }
 0x17a   : > { %v917_v0 = vpop.f32.mrf.mxu0  ;;  %v997_v1 = vpop.f32.mrf.mxu1  ;;  %2958 = verf.f32 %v1160_v56  ;;  %v1161_v3 = vmul.f32 0.70710677, %v3653_v60 }
 0x17b   : > { %2960 = verf.f32 %v1129_v63  ;;  %v1130_v5 = vmul.f32 0.70710677, %v3656_v61  ;;  %v1162_v6 = vmul.f32 0.70710677, %v3659_v62  ;;  %v3666_v9 = vadd.f32 %v917_v0, %v3637_v26 }
 0x17c   : > { %v921_v7 = vpop.f32.mrf.mxu0  ;;  %v1001_v8 = vpop.f32.mrf.mxu1  ;;  %2962 = verf.f32 %v1161_v3  ;;  %v3669_v10 = vadd.f32 %v997_v1, %v3637_v26  ;;  %v1065_v63 = vmul.f32 0.5, %v3650_v57 }
 0x17d   : > { %v3672_v11 = vadd.f32 %v921_v7, %v3635_v23  ;;  %2964 = verf.f32 %v1130_v5  ;;  %v3675_v15 = vadd.f32 %v1001_v8, %v3635_v23  ;;  %v1131_v21 = vmul.f32 0.70710677, %v3666_v9 }
 0x17e   : > { %v2941_v12 = vpop.eup %2940  ;;  %v923_v16 = vpop.f32.mrf.mxu0  ;;  %2966 = verf.f32 %v1162_v6  ;;  %v1163_v27 = vmul.f32 0.70710677, %v3669_v10 }
 0x17f   : > { %v1003_v17 = vpop.f32.mrf.mxu1  ;;  %v2943_v18 = vpop.eup %2942  ;;  %v1252_v19 = vadd.f32 1.0, %v2941_v12  ;;  %2968 = verf.f32 %v1131_v21  ;;  %v1132_v33 = vmul.f32 0.70710677, %v3672_v11  ;;  %v1164_v37 = vmul.f32 0.70710677, %v3675_v15 }
 0x180   : > { %v1284_v22 = vadd.f32 1.0, %v2943_v18  ;;  %v925_v28 = vpop.f32.mrf.mxu0  ;;  %v2945_v30 = vpop.eup %2944  ;;  %2970 = verf.f32 %v1163_v27  ;;  %v3691_v43 = vadd.f32 %v923_v16, %v3637_v26  ;;  %v3694_v48 = vadd.f32 %v1003_v17, %v3637_v26 }
 0x181   : > { %v1005_v29 = vpop.f32.mrf.mxu1  ;;  %v2947_v34 = vpop.eup %2946  ;;  %v1253_v35 = vadd.f32 1.0, %v2945_v30  ;;  %v1316_v41 = vmul.f32 %v1252_v19, %v1060_v2  ;;  %2972 = verf.f32 %v1132_v33  ;;  %v3700_v55 = vadd.f32 %v925_v28, %v3635_v23 }
 0x182   : > { %v3686_v38 = vpop.f32.mrf.mxu0  ;;  %v2949_v40 = vpop.eup %2948  ;;  %v1285_v42 = vadd.f32 1.0, %v2947_v34  ;;  %v1348_v45 = vmul.f32 %v1284_v22, %v1092_v4  ;;  %v1133_v54 = vmul.f32 0.70710677, %v3691_v43  ;;  %2974 = verf.f32 %v1164_v37 }
 0x183   : > { %v3688_v39 = vpop.f32.mrf.mxu1  ;;  %v2951_v44 = vpop.eup %2950  ;;  %v1317_v46 = vmul.f32 %v1253_v35, %v1061_v13  ;;  %v1254_v47 = vadd.f32 1.0, %v2949_v40  ;;  %v1165_v12 = vmul.f32 0.70710677, %v3694_v48  ;;  %v1134_v19 = vmul.f32 0.70710677, %v3700_v55 }
 0x184   : > { %v931_v49 = vpop.f32.mrf.mxu0  ;;  %v2953_v51 = vpop.eup %2952  ;;  %v1349_v52 = vmul.f32 %v1285_v42, %v1093_v14  ;;  %v1286_v53 = vadd.f32 1.0, %v2951_v44  ;;  %2976 = verf.f32 %v1133_v54  ;;  %v1066_v35 = vmul.f32 0.5, %v3656_v61 }
 0x185   : > { %v3696_v50 = vpop.f32.mrf.mxu1  ;;  %v2955_v56 = vpop.eup %2954  ;;  %v2597_v58 = vpack.c.bf16 %v1317_v46, %v1316_v41  ;;  %v1255_v59 = vadd.f32 1.0, %v2953_v51  ;;  %v1318_v4 = vmul.f32 %v1254_v47, %v1062_v20  ;;  %v3720_v20 = vadd.f32 %v1005_v29, %v3635_v23 }
 0x186   : > { %v3703_v0 = vpop.f32.mrf.mxu0  ;;  %v2957_v2 = vpop.eup %2956  ;;  %v2613_v3 = vpack.c.bf16 %v1349_v52, %v1348_v45  ;;  %v1287_v5 = vadd.f32 1.0, %v2955_v56  ;;  %v1350_v7 = vmul.f32 %v1286_v53, %v1094_v24  ;;  %2978 = verf.f32 %v1165_v12 }
 0x187   : > { %v3705_v1 = vpop.f32.mrf.mxu1  ;;  %v2959_v6 = vpop.eup %2958  ;;  %1575 = vst [vmem:[%s3709_s12] sm:$0xff] %v2597_v58  ;;  %v1319_v8 = vmul.f32 %v1255_v59, %v1063_v25  ;;  %v1256_v57 = vadd.f32 1.0, %v2957_v2  ;;  %v1097_v25 = vmul.f32 0.5, %v3653_v60  ;;  %2980 = verf.f32 %v1134_v19 }
 0x188   : > { %v3713_v13 = vpop.f32.mrf.mxu0  ;;  %v2961_v16 = vpop.eup %2960  ;;  %1591 = vst [vmem:[%s3709_s12 + $0x80] sm:$0xff] %v2613_v3  ;;  %v1351_v17 = vmul.f32 %v1287_v5, %v1095_v31  ;;  %v1288_v18 = vadd.f32 1.0, %v2959_v6  ;;  %v1166_v60 = vmul.f32 0.70710677, %v3720_v20  ;;  %v3741_v61 = vadd.f32 %v3688_v39, %v3637_v26 }
 0x189   : > { %v3715_v14 = vpop.f32.mrf.mxu1  ;;  %v2963_v21 = vpop.eup %2962  ;;  %v2598_v22 = vpack.c.bf16 %v1319_v8, %v1318_v4  ;;  %v1257_v24 = vadd.f32 1.0, %v2961_v16  ;;  %v1320_v33 = vmul.f32 %v1256_v57, %v3679_v32  ;;  %v3737_v32 = vadd.f32 %v3686_v38, %v3637_v26 }
 0x18a   : > { %v3723_v27 = vpop.f32.mrf.mxu0  ;;  %v2965_v30 = vpop.eup %2964  ;;  %v2614_v31 = vpack.c.bf16 %v1351_v17, %v1350_v7  ;;  %v1289_v34 = vadd.f32 1.0, %v2963_v21  ;;  %v1352_v37 = vmul.f32 %v1288_v18, %v3683_v36  ;;  %v1098_v46 = vmul.f32 0.5, %v3659_v62 }
 0x18b   : > { %v3725_v28 = vpop.f32.mrf.mxu1  ;;  %v2967_v29 = vpop.eup %2966  ;;  %1576 = vst [vmem:[%s3709_s12 + $0x8] sm:$0xff] %v2598_v22  ;;  %v1321_v40 = vmul.f32 %v1257_v24, %v1065_v63  ;;  %v1258_v44 = vadd.f32 1.0, %v2965_v30  ;;  %v3745_v51 = vadd.f32 %v931_v49, %v3635_v23  ;;  %v1067_v38 = vmul.f32 0.5, %v3666_v9 }
 0x18c   : > { %v3732_v41 = vpop.f32.mrf.mxu0  ;;  %1592 = vst [vmem:[%s3709_s12 + $0x88] sm:$0xff] %v2614_v31  ;;  %v1353_v42 = vmul.f32 %v1289_v34, %v1097_v25  ;;  %v2969_v45 = vpop.eup %2968  ;;  %v1290_v47 = vadd.f32 1.0, %v2967_v29  ;;  %2982 = verf.f32 %v1166_v60  ;;  %v1099_v39 = vmul.f32 0.5, %v3669_v10 }
 0x18d   : > { %v2599_v36 = vpack.c.bf16 %v1321_v40, %v1320_v33  ;;  %v3747_v52 = vpop.f32.mrf.mxu1  ;;  %v2971_v53 = vpop.eup %2970  ;;  %v1259_v56 = vadd.f32 1.0, %v2969_v45  ;;  %v1135_v62 = vmul.f32 0.70710677, %v3737_v32  ;;  %v1167_v63 = vmul.f32 0.70710677, %v3741_v61 }
 0x18e   : > { %v2615_v54 = vpack.c.bf16 %v1353_v42, %v1352_v37  ;;  %v2973_v58 = vpop.eup %2972  ;;  %v1291_v59 = vadd.f32 1.0, %v2971_v53  ;;  %v3754_v2 = vpop.f32.mrf.mxu0  ;;  %v1322_v49 = vmul.f32 %v1258_v44, %v1066_v35  ;;  %v1068_v4 = vmul.f32 0.5, %v3672_v11 }
 0x18f   : > { %1577 = vst [vmem:[%s3709_s12 + $0x10] sm:$0xff] %v2599_v36  ;;  %v1323_v3 = vmul.f32 %v1259_v56, %v1067_v38  ;;  %v1136_v9 = vmul.f32 0.70710677, %v3745_v51  ;;  %v1354_v5 = vmul.f32 %v1290_v47, %v1098_v46  ;;  %2984 = verf.f32 %v1135_v62  ;;  %v1023_v7 = vpop.f32.mrf.mxu1  ;;  %v2975_v8 = vpop.eup %2974 }
 0x190   : > { %1593 = vst [vmem:[%s3709_s12 + $0x90] sm:$0xff] %v2615_v54  ;;  %v1355_v6 = vmul.f32 %v1291_v59, %v1099_v39  ;;  %v1012_v10 = vadd.f32 %v3696_v50, %v3635_v23  ;;  %v1260_v12 = vadd.f32 1.0, %v2973_v58  ;;  %2986 = verf.f32 %v1167_v63  ;;  %v945_v21 = vpop.f32.mrf.mxu0 }
 0x191   : > { %v2600_v57 = vpack.c.bf16 %v1323_v3, %v1322_v49  ;;  %v934_v16 = vadd.f32 %v3703_v0, %v3637_v26  ;;  %v2977_v17 = vpop.eup %2976  ;;  %v1100_v18 = vmul.f32 0.5, %v3675_v15  ;;  %v1069_v19 = vmul.f32 0.5, %v3691_v43  ;;  %v1025_v43 = vpop.f32.mrf.mxu1 }
 0x192   : > { %v2616_v11 = vpack.c.bf16 %v1355_v6, %v1354_v5  ;;  %2988 = verf.f32 %v1136_v9  ;;  %v1261_v22 = vadd.f32 1.0, %v2977_v17  ;;  %v1101_v50 = vmul.f32 0.5, %v3694_v48  ;;  %v947_v37 = vpop.f32.mrf.mxu0 }
 0x193   : > { %1578 = vst [vmem:[%s3709_s12 + $0x18] sm:$0xff] %v2600_v57  ;;  %v1168_v24 = vmul.f32 0.70710677, %v1012_v10  ;;  %v1137_v25 = vmul.f32 0.70710677, %v934_v16  ;;  %v1292_v30 = vadd.f32 1.0, %v2975_v8  ;;  %v1014_v31 = vadd.f32 %v3705_v1, %v3637_v26  ;;  %v2979_v33 = vpop.eup %2978  ;;  %v1027_v36 = vpop.f32.mrf.mxu1 }
 0x194   : > { %1594 = vst [vmem:[%s3709_s12 + $0x98] sm:$0xff] %v2616_v11  ;;  %v3772_v0 = vadd.f32 %v3713_v13, %v3635_v23  ;;  %v3776_v15 = vadd.f32 %v3715_v14, %v3635_v23  ;;  %v1324_v34 = vmul.f32 %v1260_v12, %v1068_v4  ;;  %v1325_v35 = vmul.f32 %v1261_v22, %v1069_v19  ;;  %v2981_v40 = vpop.eup %2980  ;;  %v951_v56 = vpop.f32.mrf.mxu0 }
 0x195   : > { %2990 = verf.f32 %v1168_v24  ;;  %v3780_v48 = vadd.f32 %v3723_v27, %v3637_v26  ;;  %v1293_v29 = vadd.f32 1.0, %v2979_v33  ;;  %v1070_v1 = vmul.f32 0.5, %v3700_v55  ;;  %v1031_v62 = vpop.f32.mrf.mxu1 }
 0x196   : > { %2992 = verf.f32 %v1137_v25  ;;  %v1169_v13 = vmul.f32 0.70710677, %v1014_v31  ;;  %v2601_v60 = vpack.c.bf16 %v1325_v35, %v1324_v34  ;;  %v1138_v14 = vmul.f32 0.70710677, %v3772_v0 }
 0x197   : > { %v3786_v42 = vadd.f32 %v3725_v28, %v3637_v26  ;;  %v3790_v44 = vadd.f32 %v3732_v41, %v3635_v23  ;;  %v1356_v27 = vmul.f32 %v1292_v30, %v1100_v18  ;;  %v1357_v45 = vmul.f32 %v1293_v29, %v1101_v50  ;;  %v1033_v18 = vpop.f32.mrf.mxu1 }
 0x198   : > { %2994 = verf.f32 %v1169_v13  ;;  %v1170_v55 = vmul.f32 0.70710677, %v3776_v15  ;;  %1579 = vst [vmem:[%s3709_s12 + $0x20] sm:$0xff] %v2601_v60  ;;  %v1102_v46 = vmul.f32 0.5, %v3720_v20  ;;  %v1071_v47 = vmul.f32 0.5, %v3737_v32 }
 0x199   : > { %2996 = verf.f32 %v1138_v14  ;;  %v1139_v28 = vmul.f32 0.70710677, %v3780_v48  ;;  %v2983_v53 = vpop.eup %2982  ;;  %v2617_v54 = vpack.c.bf16 %v1357_v45, %v1356_v27  ;;  %v1103_v41 = vmul.f32 0.5, %v3741_v61 }
 0x19a   : > { %v1072_v38 = vmul.f32 0.5, %v3745_v51  ;;  %2998 = verf.f32 %v1170_v55  ;;  %v1262_v58 = vadd.f32 1.0, %v2981_v40  ;;  %v1171_v39 = vmul.f32 0.70710677, %v3786_v42  ;;  %v3838_v40 = vpop.f32.mrf.mxu1 }
 0x19b   : > { %3000 = verf.f32 %v1139_v28  ;;  %v1140_v59 = vmul.f32 0.70710677, %v3790_v44  ;;  %1595 = vst [vmem:[%s3709_s12 + $0xa0] sm:$0xff] %v2617_v54  ;;  %v3802_v20 = vmul.f32 0.5, %v1012_v10  ;;  %v3806_v32 = vadd.f32 %v3747_v52, %v3635_v23  ;;  %v3819_v10 = vpop.f32.mrf.mxu0 }
 0x19c   : > { %v3810_v61 = vadd.f32 %v3754_v2, %v3637_v26  ;;  %v3813_v51 = vadd.f32 %v1023_v7, %v3637_v26  ;;  %v2985_v63 = vpop.eup %2984  ;;  %v1294_v49 = vadd.f32 1.0, %v2983_v53  ;;  %v1073_v3 = vmul.f32 0.5, %v934_v16 }
 0x19d   : > { %3002 = verf.f32 %v1171_v39  ;;  %v3816_v4 = vadd.f32 %v945_v21, %v3635_v23  ;;  %v2987_v9 = vpop.eup %2986  ;;  %v1263_v5 = vadd.f32 1.0, %v2985_v63  ;;  %v1105_v6 = vmul.f32 0.5, %v1014_v31  ;;  %v955_v31 = vpop.f32.mrf.mxu0 }
 0x19e   : > { %3004 = verf.f32 %v1140_v59  ;;  %v1172_v52 = vmul.f32 0.70710677, %v3806_v32  ;;  %v1326_v8 = vmul.f32 %v1262_v58, %v1070_v1  ;;  %v1295_v7 = vadd.f32 1.0, %v2987_v9 }
 0x19f   : > { %v2989_v2 = vpop.eup %2988  ;;  %v1141_v57 = vmul.f32 0.70710677, %v3810_v61  ;;  %v3823_v12 = vadd.f32 %v1025_v43, %v3635_v23  ;;  %v1327_v16 = vmul.f32 %v1263_v5, %v1071_v47  ;;  %v1173_v17 = vmul.f32 0.70710677, %v3813_v51 }
 0x1a0   : > { %3006 = verf.f32 %v1172_v52  ;;  %v3827_v11 = vadd.f32 %v947_v37, %v3637_v26  ;;  %v1358_v19 = vmul.f32 %v1294_v49, %v1102_v46  ;;  %v1359_v21 = vmul.f32 %v1295_v7, %v1103_v41 }
 0x1a1   : > { %3008 = verf.f32 %v1141_v57  ;;  %v1142_v22 = vmul.f32 0.70710677, %v3816_v4  ;;  %v2602_v24 = vpack.c.bf16 %v1327_v16, %v1326_v8  ;;  %v1264_v25 = vadd.f32 1.0, %v2989_v2 }
 0x1a2   : > { %v2991_v50 = vpop.eup %2990  ;;  %v1074_v30 = vmul.f32 0.5, %v3772_v0  ;;  %3010 = verf.f32 %v1173_v17  ;;  %v2618_v33 = vpack.c.bf16 %v1359_v21, %v1358_v19  ;;  %v1106_v34 = vmul.f32 0.5, %v3776_v15 }
 0x1a3   : > { %v2993_v43 = vpop.eup %2992  ;;  %3012 = verf.f32 %v1142_v22  ;;  %v1174_v35 = vmul.f32 0.70710677, %v3823_v12  ;;  %1580 = vst [vmem:[%s3709_s12 + $0x28] sm:$0xff] %v2602_v24  ;;  %v1296_v29 = vadd.f32 1.0, %v2991_v50  ;;  %v1143_v13 = vmul.f32 0.70710677, %v3827_v11 }
 0x1a4   : > { %v1265_v1 = vadd.f32 1.0, %v2993_v43  ;;  %v3836_v37 = vadd.f32 %v1027_v36, %v3637_v26  ;;  %1596 = vst [vmem:[%s3709_s12 + $0xa8] sm:$0xff] %v2618_v33  ;;  %v1075_v60 = vmul.f32 0.5, %v3780_v48  ;;  %v3843_v15 = vadd.f32 %v951_v56, %v3635_v23  ;;  %v957_v36 = vpop.f32.mrf.mxu0 }
 0x1a5   : > { %v2995_v0 = vpop.eup %2994  ;;  %3014 = verf.f32 %v1174_v35  ;;  %v3846_v14 = vadd.f32 %v1031_v62, %v3635_v23  ;;  %v1328_v45 = vmul.f32 %v1264_v25, %v1072_v38  ;;  %v1107_v53 = vmul.f32 0.5, %v3786_v42  ;;  %v1037_v38 = vpop.f32.mrf.mxu1 }
 0x1a6   : > { %v2997_v27 = vpop.eup %2996  ;;  %v1329_v55 = vmul.f32 %v1265_v1, %v1073_v3  ;;  %v1297_v46 = vadd.f32 1.0, %v2995_v0  ;;  %3016 = verf.f32 %v1143_v13  ;;  %v1175_v48 = vmul.f32 0.70710677, %v3836_v37 }
 0x1a7   : > { %v2999_v47 = vpop.eup %2998  ;;  %v1266_v28 = vadd.f32 1.0, %v2997_v27  ;;  %v1144_v54 = vmul.f32 0.70710677, %v3843_v15  ;;  %v1360_v56 = vmul.f32 %v1296_v29, %v3802_v20  ;;  %v1076_v63 = vmul.f32 0.5, %v3790_v44  ;;  %v961_v20 = vpop.f32.mrf.mxu0 }
 0x1a8   : > { %v3001_v41 = vpop.eup %3000  ;;  %v2603_v58 = vpack.c.bf16 %v1329_v55, %v1328_v45  ;;  %v1361_v39 = vmul.f32 %v1297_v46, %v1105_v6  ;;  %v1298_v59 = vadd.f32 1.0, %v2999_v47  ;;  %3018 = verf.f32 %v1175_v48 }
 0x1a9   : > { %v1267_v62 = vadd.f32 1.0, %v3001_v41  ;;  %v1176_v49 = vmul.f32 0.70710677, %v3846_v14  ;;  %v1330_v9 = vmul.f32 %v1266_v28, %v1074_v30  ;;  %3020 = verf.f32 %v1144_v54  ;;  %v963_v30 = vpop.f32.mrf.mxu0 }
 0x1aa   : > { %v3003_v3 = vpop.eup %3002  ;;  %1581 = vst [vmem:[%s3709_s12 + $0x30] sm:$0xff] %v2603_v58  ;;  %v2619_v42 = vpack.c.bf16 %v1361_v39, %v1360_v56  ;;  %v3857_v5 = vadd.f32 %v3819_v10, %v3637_v26  ;;  %v3860_v8 = vadd.f32 %v1033_v18, %v3637_v26  ;;  %v1362_v44 = vmul.f32 %v1298_v59, %v1106_v34  ;;  %v1041_v10 = vpop.f32.mrf.mxu1 }
 0x1ab   : > { %v3005_v6 = vpop.eup %3004  ;;  %v1331_v52 = vmul.f32 %v1267_v62, %v1075_v60  ;;  %v1299_v2 = vadd.f32 1.0, %v3003_v3  ;;  %3022 = verf.f32 %v1176_v49  ;;  %v1108_v7 = vmul.f32 0.5, %v3806_v32 }
 0x1ac   : > { %1597 = vst [vmem:[%s3709_s12 + $0xb0] sm:$0xff] %v2619_v42  ;;  %v1145_v57 = vmul.f32 0.70710677, %v3857_v5  ;;  %v3866_v16 = vadd.f32 %v955_v31, %v3635_v23  ;;  %v1268_v22 = vadd.f32 1.0, %v3005_v6  ;;  %v1177_v50 = vmul.f32 0.70710677, %v3860_v8 }
 0x1ad   : > { %v3007_v17 = vpop.eup %3006  ;;  %v2604_v19 = vpack.c.bf16 %v1331_v52, %v1330_v9  ;;  %v1363_v21 = vmul.f32 %v1299_v2, %v1107_v53  ;;  %v1077_v25 = vmul.f32 0.5, %v3810_v61  ;;  %v1109_v32 = vmul.f32 0.5, %v3813_v51  ;;  %v1043_v51 = vpop.f32.mrf.mxu1 }
 0x1ae   : > { %v3009_v24 = vpop.eup %3008  ;;  %v1300_v18 = vadd.f32 1.0, %v3007_v17  ;;  %3024 = verf.f32 %v1145_v57  ;;  %v1146_v34 = vmul.f32 0.70710677, %v3866_v16  ;;  %v1078_v1 = vmul.f32 0.5, %v3816_v4 }
 0x1af   : > { %v3011_v43 = vpop.eup %3010  ;;  %1582 = vst [vmem:[%s3709_s12 + $0x38] sm:$0xff] %v2604_v19  ;;  %v2620_v31 = vpack.c.bf16 %v1363_v21, %v1362_v44  ;;  %v1269_v33 = vadd.f32 1.0, %v3009_v24  ;;  %3026 = verf.f32 %v1177_v50  ;;  %v3876_v13 = vadd.f32 %v3838_v40, %v3635_v23  ;;  %v965_v40 = vpop.f32.mrf.mxu0 }
 0x1b0   : > { %v3013_v35 = vpop.eup %3012  ;;  %v1301_v29 = vadd.f32 1.0, %v3011_v43  ;;  %v3879_v61 = vadd.f32 %v957_v36, %v3637_v26  ;;  %v1332_v0 = vmul.f32 %v1268_v22, %v1076_v63  ;;  %3028 = verf.f32 %v1146_v34  ;;  %v1045_v39 = vpop.f32.mrf.mxu1 }
 0x1b1   : > { %1598 = vst [vmem:[%s3709_s12 + $0xb8] sm:$0xff] %v2620_v31  ;;  %v1333_v60 = vmul.f32 %v1269_v33, %v1077_v25  ;;  %v3883_v27 = vadd.f32 %v1037_v38, %v3637_v26  ;;  %v1364_v55 = vmul.f32 %v1300_v18, %v1108_v7  ;;  %v1270_v4 = vadd.f32 1.0, %v3013_v35 }
 0x1b2   : > { %v3015_v45 = vpop.eup %3014  ;;  %v1365_v46 = vmul.f32 %v1301_v29, %v1109_v32  ;;  %v1178_v47 = vmul.f32 0.70710677, %v3876_v13  ;;  %v1110_v53 = vmul.f32 0.5, %v3823_v12  ;;  %v1079_v48 = vmul.f32 0.5, %v3827_v11  ;;  %v1047_v57 = vpop.f32.mrf.mxu1 }
 0x1b3   : > { %v3017_v28 = vpop.eup %3016  ;;  %v2605_v36 = vpack.c.bf16 %v1333_v60, %v1332_v0  ;;  %v1147_v54 = vmul.f32 0.70710677, %v3879_v61  ;;  %v1111_v58 = vmul.f32 0.5, %v3836_v37  ;;  %v1302_v59 = vadd.f32 1.0, %v3015_v45  ;;  %v967_v37 = vpop.f32.mrf.mxu0 }
 0x1b4   : > { %v2621_v41 = vpack.c.bf16 %v1365_v46, %v1364_v55  ;;  %v1271_v56 = vadd.f32 1.0, %v3017_v28  ;;  %3030 = verf.f32 %v1178_v47  ;;  %v1179_v38 = vmul.f32 0.70710677, %v3883_v27  ;;  %v1051_v34 = vpop.f32.mrf.mxu1 }
 0x1b5   : > { %1583 = vst [vmem:[%s3709_s12 + $0x40] sm:$0xff] %v2605_v36  ;;  %3032 = verf.f32 %v1147_v54  ;;  %v3893_v62 = vadd.f32 %v961_v20, %v3635_v23  ;;  %v3019_v63 = vpop.eup %3018  ;;  %v1334_v12 = vmul.f32 %v1270_v4, %v1078_v1  ;;  %v3897_v49 = vadd.f32 %v1041_v10, %v3635_v23  ;;  %v971_v24 = vpop.f32.mrf.mxu0 }
 0x1b6   : > { %1599 = vst [vmem:[%s3709_s12 + $0xc0] sm:$0xff] %v2621_v41  ;;  %v1335_v11 = vmul.f32 %v1271_v56, %v1079_v48  ;;  %v3900_v3 = vadd.f32 %v963_v30, %v3637_v26  ;;  %v3021_v42 = vpop.eup %3020  ;;  %v1303_v9 = vadd.f32 1.0, %v3019_v63  ;;  %3034 = verf.f32 %v1179_v38  ;;  %v1053_v36 = vpop.f32.mrf.mxu1 }
 0x1b7   : > { %v1148_v6 = vmul.f32 0.70710677, %v3893_v62  ;;  %v3904_v20 = vadd.f32 %v1043_v51, %v3637_v26  ;;  %v1080_v44 = vmul.f32 0.5, %v3843_v15  ;;  %v1180_v7 = vmul.f32 0.70710677, %v3897_v49  ;;  %v973_v55 = vpop.f32.mrf.mxu0 }
 0x1b8   : > { %v3023_v52 = vpop.eup %3022  ;;  %v2606_v2 = vpack.c.bf16 %v1335_v11, %v1334_v12  ;;  %v1366_v10 = vmul.f32 %v1302_v59, %v1110_v53  ;;  %v1367_v17 = vmul.f32 %v1303_v9, %v1111_v58  ;;  %v1112_v19 = vmul.f32 0.5, %v3846_v14 }
 0x1b9   : > { %3036 = verf.f32 %v1148_v6  ;;  %v1272_v21 = vadd.f32 1.0, %v3021_v42  ;;  %v1304_v22 = vadd.f32 1.0, %v3023_v52  ;;  %v1149_v50 = vmul.f32 0.70710677, %v3900_v3  ;;  %v975_v63 = vpop.f32.mrf.mxu0 }
 0x1ba   : > { %1584 = vst [vmem:[%s3709_s12 + $0x48] sm:$0xff] %v2606_v2  ;;  %3038 = verf.f32 %v1180_v7  ;;  %v2622_v25 = vpack.c.bf16 %v1367_v17, %v1366_v10  ;;  %v1081_v15 = vmul.f32 0.5, %v3857_v5  ;;  %v1181_v32 = vmul.f32 0.70710677, %v3904_v20 }
 0x1bb   : > { %v3025_v18 = vpop.eup %3024  ;;  %v3914_v30 = vadd.f32 %v965_v40, %v3635_v23  ;;  %3040 = verf.f32 %v1149_v50  ;;  %v3917_v31 = vadd.f32 %v1045_v39, %v3635_v23  ;;  %v3920_v33 = vadd.f32 %v967_v37, %v3637_v26  ;;  %v977_v50 = vpop.f32.mrf.mxu0 }
 0x1bc   : > { %v3027_v43 = vpop.eup %3026  ;;  %v1273_v14 = vadd.f32 1.0, %v3025_v18  ;;  %1600 = vst [vmem:[%s3709_s12 + $0xc8] sm:$0xff] %v2622_v25  ;;  %v1113_v35 = vmul.f32 0.5, %v3860_v8  ;;  %3042 = verf.f32 %v1181_v32  ;;  %v1336_v51 = vmul.f32 %v1272_v21, %v1080_v44 }
 0x1bd   : > { %v1305_v29 = vadd.f32 1.0, %v3027_v43  ;;  %v1150_v5 = vmul.f32 0.70710677, %v3914_v30  ;;  %v3029_v1 = vpop.eup %3028  ;;  %v1368_v0 = vmul.f32 %v1304_v22, %v1112_v19  ;;  %v1182_v45 = vmul.f32 0.70710677, %v3917_v31 }
 0x1be   : > { %v1337_v60 = vmul.f32 %v1273_v14, %v1081_v15  ;;  %v1274_v4 = vadd.f32 1.0, %v3029_v1  ;;  %v1151_v47 = vmul.f32 0.70710677, %v3920_v33  ;;  %v3928_v8 = vadd.f32 %v1047_v57, %v3637_v26 }
 0x1bf   : > { %v1369_v46 = vmul.f32 %v1305_v29, %v1113_v35  ;;  %3044 = verf.f32 %v1150_v5  ;;  %v3931_v28 = vadd.f32 %v971_v24, %v3635_v23  ;;  %v1082_v54 = vmul.f32 0.5, %v3866_v16 }
 0x1c0   : > { %v2607_v40 = vpack.c.bf16 %v1337_v60, %v1336_v51  ;;  %3046 = verf.f32 %v1182_v45  ;;  %v3935_v41 = vadd.f32 %v1051_v34, %v3635_v23  ;;  %v1114_v58 = vmul.f32 0.5, %v3876_v13 }
 0x1c1   : > { %v3031_v53 = vpop.eup %3030  ;;  %v2623_v48 = vpack.c.bf16 %v1369_v46, %v1368_v0  ;;  %3048 = verf.f32 %v1151_v47  ;;  %v1083_v39 = vmul.f32 0.5, %v3879_v61  ;;  %v1115_v59 = vmul.f32 0.5, %v3883_v27  ;;  %v1055_v61 = vpop.f32.mrf.mxu1 }
 0x1c2   : > { %v3033_v56 = vpop.eup %3032  ;;  %1585 = vst [vmem:[%s3709_s12 + $0x50] sm:$0xff] %v2607_v40  ;;  %v1183_v38 = vmul.f32 0.70710677, %v3928_v8  ;;  %v1306_v12 = vadd.f32 1.0, %v3031_v53  ;;  %v1152_v16 = vmul.f32 0.70710677, %v3931_v28  ;;  %v1338_v9 = vmul.f32 %v1274_v4, %v1082_v54 }
 0x1c3   : > { %1601 = vst [vmem:[%s3709_s12 + $0xd0] sm:$0xff] %v2623_v48  ;;  %v1275_v11 = vadd.f32 1.0, %v3033_v56  ;;  %v1184_v37 = vmul.f32 0.70710677, %v3935_v41  ;;  %v3035_v42 = vpop.eup %3034  ;;  %v3946_v6 = vadd.f32 %v973_v55, %v3637_v26  ;;  %v3949_v13 = vadd.f32 %v1053_v36, %v3637_v26  ;;  %v1057_v15 = vpop.f32.mrf.mxu1 }
 0x1c4   : > { %3050 = verf.f32 %v1183_v38  ;;  %v1307_v52 = vadd.f32 1.0, %v3035_v42  ;;  %v3952_v2 = vadd.f32 %v975_v63, %v3635_v23  ;;  %v1084_v7 = vmul.f32 0.5, %v3893_v62 }
 0x1c5   : > { %v1339_v27 = vmul.f32 %v1275_v11, %v1083_v39  ;;  %3052 = verf.f32 %v1152_v16  ;;  %v1153_v57 = vmul.f32 0.70710677, %v3946_v6  ;;  %v1370_v17 = vmul.f32 %v1306_v12, %v1114_v58 }
 0x1c6   : > { %v3037_v44 = vpop.eup %3036  ;;  %3054 = verf.f32 %v1184_v37  ;;  %v1371_v21 = vmul.f32 %v1307_v52, %v1115_v59  ;;  %v1185_v22 = vmul.f32 0.70710677, %v3949_v13  ;;  %v1116_v18 = vmul.f32 0.5, %v3897_v49 }
 0x1c7   : > { %v3039_v10 = vpop.eup %3038  ;;  %v2608_v19 = vpack.c.bf16 %v1339_v27, %v1338_v9  ;;  %v1276_v24 = vadd.f32 1.0, %v3037_v44  ;;  %3056 = verf.f32 %v1153_v57  ;;  %v1154_v25 = vmul.f32 0.70710677, %v3952_v2 }
 0x1c8   : > { %v3041_v32 = vpop.eup %3040  ;;  %v2624_v62 = vpack.c.bf16 %v1371_v21, %v1370_v17  ;;  %v1308_v43 = vadd.f32 1.0, %v3039_v10  ;;  %3058 = verf.f32 %v1185_v22  ;;  %v3961_v14 = vadd.f32 %v1055_v61, %v3635_v23 }
 0x1c9   : > { %1586 = vst [vmem:[%s3709_s12 + $0x58] sm:$0xff] %v2608_v19  ;;  %v3043_v34 = vpop.eup %3042  ;;  %v1085_v35 = vmul.f32 0.5, %v3900_v3  ;;  %v1277_v29 = vadd.f32 1.0, %v3041_v32  ;;  %3060 = verf.f32 %v1154_v25  ;;  %v3965_v5 = vadd.f32 %v977_v50, %v3637_v26 }
 0x1ca   : > { %1602 = vst [vmem:[%s3709_s12 + $0xd8] sm:$0xff] %v2624_v62  ;;  %v1117_v49 = vmul.f32 0.5, %v3904_v20  ;;  %v1309_v1 = vadd.f32 1.0, %v3043_v34  ;;  %v1186_v51 = vmul.f32 0.70710677, %v3961_v14  ;;  %v3971_v0 = vadd.f32 %v1057_v15, %v3637_v26 }
 0x1cb   : > { %v1340_v23 = vmul.f32 %v1276_v24, %v1084_v7  ;;  %v1341_v45 = vmul.f32 %v1277_v29, %v1085_v35  ;;  %v1155_v3 = vmul.f32 0.70710677, %v3965_v5  ;;  %v1372_v46 = vmul.f32 %v1308_v43, %v1116_v18 }
 0x1cc   : > { %v3045_v60 = vpop.eup %3044  ;;  %v1373_v4 = vmul.f32 %v1309_v1, %v1117_v49  ;;  %3062 = verf.f32 %v1186_v51  ;;  %v1187_v36 = vmul.f32 0.70710677, %v3971_v0  ;;  %v1086_v26 = vmul.f32 0.5, %v3914_v30 }
 0x1cd   : > { %v3047_v55 = vpop.eup %3046  ;;  %v1278_v47 = vadd.f32 1.0, %v3045_v60  ;;  %v2609_v20 = vpack.c.bf16 %v1341_v45, %v1340_v23  ;;  %3064 = verf.f32 %v1155_v3  ;;  %v1087_v48 = vmul.f32 0.5, %v3920_v33 }
 0x1ce   : > { %v3049_v40 = vpop.eup %3048  ;;  %v2625_v53 = vpack.c.bf16 %v1373_v4, %v1372_v46  ;;  %v1310_v56 = vadd.f32 1.0, %v3047_v55  ;;  %3066 = verf.f32 %v1187_v36  ;;  %v1118_v63 = vmul.f32 0.5, %v3917_v31 }
 0x1cf   : > { %v1279_v54 = vadd.f32 1.0, %v3049_v40  ;;  %1587 = vst [vmem:[%s3709_s12 + $0x60] sm:$0xff] %v2609_v20  ;;  %v1342_v39 = vmul.f32 %v1278_v47, %v1086_v26  ;;  %v1119_v12 = vmul.f32 0.5, %v3928_v8  ;;  %v1088_v44 = vmul.f32 0.5, %v3931_v28 }
 0x1d0   : > { %1603 = vst [vmem:[%s3709_s12 + $0xe0] sm:$0xff] %v2625_v53  ;;  %v1374_v30 = vmul.f32 %v1310_v56, %v1118_v63  ;;  %v1089_v7 = vmul.f32 0.5, %v3946_v6  ;;  %v1120_v8 = vmul.f32 0.5, %v3935_v41  ;;  %v1121_v10 = vmul.f32 0.5, %v3949_v13 }
 0x1d1   : > { %v3051_v58 = vpop.eup %3050  ;;  %v1343_v59 = vmul.f32 %v1279_v54, %v1087_v48  ;;  %v1090_v6 = vmul.f32 0.5, %v3952_v2  ;;  %v1091_v13 = vmul.f32 0.5, %v3965_v5  ;;  %v1122_v43 = vmul.f32 0.5, %v3961_v14 }
 0x1d2   : > { %v3053_v38 = vpop.eup %3052  ;;  %v1311_v11 = vadd.f32 1.0, %v3051_v58  ;;  %v1123_v29 = vmul.f32 0.5, %v3971_v0 }
 0x1d3   : > { %v3055_v16 = vpop.eup %3054  ;;  %v2610_v37 = vpack.c.bf16 %v1343_v59, %v1342_v39  ;;  %v1280_v42 = vadd.f32 1.0, %v3053_v38 }
 0x1d4   : > { %v1375_v33 = vmul.f32 %v1311_v11, %v1119_v12  ;;  %v3057_v9 = vpop.eup %3056  ;;  %v1312_v61 = vadd.f32 1.0, %v3055_v16 }
 0x1d5   : > { %1588 = vst [vmem:[%s3709_s12 + $0x68] sm:$0xff] %v2610_v37  ;;  %v3059_v27 = vpop.eup %3058  ;;  %v1281_v31 = vadd.f32 1.0, %v3057_v9  ;;  %v1344_v19 = vmul.f32 %v1280_v42, %v1088_v44 }
 0x1d6   : > { %v2626_v52 = vpack.c.bf16 %v1375_v33, %v1374_v30  ;;  %v3061_v57 = vpop.eup %3060  ;;  %v1313_v17 = vadd.f32 1.0, %v3059_v27  ;;  %v1376_v22 = vmul.f32 %v1312_v61, %v1120_v8 }
 0x1d7   : > { %v1345_v21 = vmul.f32 %v1281_v31, %v1089_v7  ;;  %v1282_v25 = vadd.f32 1.0, %v3061_v57 }
 0x1d8   : > { %1604 = vst [vmem:[%s3709_s12 + $0xe8] sm:$0xff] %v2626_v52  ;;  %v1377_v50 = vmul.f32 %v1313_v17, %v1121_v10 }
 0x1d9   : > { %v3063_v24 = vpop.eup %3062  ;;  %v2611_v18 = vpack.c.bf16 %v1345_v21, %v1344_v19  ;;  %v1346_v34 = vmul.f32 %v1282_v25, %v1090_v6 }
 0x1da   : > { %v3065_v28 = vpop.eup %3064  ;;  %v2627_v15 = vpack.c.bf16 %v1377_v50, %v1376_v22  ;;  %v1314_v41 = vadd.f32 1.0, %v3063_v24 }
 0x1db   : > { %1589 = vst [vmem:[%s3709_s12 + $0x70] sm:$0xff] %v2611_v18  ;;  %v1283_v32 = vadd.f32 1.0, %v3065_v28  ;;  %v3067_v62 = vpop.eup %3066 }
 0x1dc   : > { %1605 = vst [vmem:[%s3709_s12 + $0xf0] sm:$0xff] %v2627_v15  ;;  %v1315_v49 = vadd.f32 1.0, %v3067_v62  ;;  %v1378_v1 = vmul.f32 %v1314_v41, %v1122_v43 }
 0x1dd   : > { %v1347_v35 = vmul.f32 %v1283_v32, %v1091_v13 }
 0x1de   : > { %v1379_v60 = vmul.f32 %v1315_v49, %v1123_v29 }
 0x1df   : > { %v2612_v51 = vpack.c.bf16 %v1347_v35, %v1346_v34 }
 0x1e0   : > { %v2628_v23 = vpack.c.bf16 %v1379_v60, %v1378_v1 }
 0x1e1   : > { %1590 = vst [vmem:[%s3709_s12 + $0x78] sm:$0xff] %v2612_v51 }
 0x1e2   : > { %1606 = vst [vmem:[%s3709_s12 + $0xf8] sm:$0xff] %v2628_v23 }
 0x1e3 PF: > { %v3068_v2 = vld [vmem:[%s3576_s4 + $0x78] sm:$0xff]   ;;  %v3070_v5 = vld [vmem:[%s3576_s4 + $0x70] sm:$0xff]   ;;  %v3072_v45 = vld [vmem:[%s3576_s4 + $0x68] sm:$0xff]   ;;  %s2630_s14 = sshll.u32 %s3248_s25, 8  ;;  %p2587_p12 = scmp.ne.s32.totalorder %s3248_s25, 1 }
 0x1e4   : > { %v3069_v14 = vld [vmem:[%s3576_s4 + $0x38] sm:$0xff]   ;;  %2632 = vmatprep.subr.bf16.mxu0 %v3068_v2  ;;  %2760 = vmatprep.subr.bf16.mxu1 %v3068_v2  ;;  %v3071_v0 = vld [vmem:[%s3576_s4 + $0x30] sm:$0xff]   ;;  %v3073_v3 = vld [vmem:[%s3576_s4 + $0x28] sm:$0xff]   ;;  %s4007_s13 = scalar_lea.vmem [#allocation3], %s2630_s14 }
 0x1e5   : > { %2633 = vmatpush3.bf16.msra.mxu0 %v3069_v14  ;;  %2768 = vmatpush3.bf16.msra.mxu1 %v3069_v14  ;;  %v3074_v55 = vld [vmem:[%s3576_s4 + $0x60] sm:$0xff]   ;;  %v3076_v4 = vld [vmem:[%s3576_s4 + $0x58] sm:$0xff]   ;;  %v3078_v40 = vld [vmem:[%s3576_s4 + $0x50] sm:$0xff]  }
 0x1e6   : > { %2634 = vmatprep.subr.bf16.mxu0 %v3070_v5  ;;  %2761 = vmatprep.subr.bf16.mxu1 %v3070_v5  ;;  %v3075_v46 = vld [vmem:[%s3576_s4 + $0x20] sm:$0xff]   ;;  %v3077_v47 = vld [vmem:[%s3576_s4 + $0x18] sm:$0xff]   ;;  %v3079_v53 = vld [vmem:[%s3576_s4 + $0x10] sm:$0xff]  }
 0x1e7   : > { %v3080_v26 = vld [vmem:[%s3576_s4 + $0x48] sm:$0xff]   ;;  %v3082_v54 = vld [vmem:[%s3576_s4 + $0x40] sm:$0xff]   ;;  %v1642_v6 = vld [vmem:[#allocation2 + $0xb0] sm:$0xff] }
 0x1e8   : > { %v3081_v48 = vld [vmem:[%s3576_s4 + $0x8] sm:$0xff]   ;;  %v3083_v56 = vld [vmem:[%s3576_s4] sm:$0xff]   ;;  %v1658_v13 = vld [vmem:[#allocation2 + $0x38] sm:$0xff] }
 0x1e9   : > { %2635 = vmatpush3.bf16.msra.mxu0 %v3071_v0  ;;  %2769 = vmatpush3.bf16.msra.mxu1 %v3071_v0  ;;  %v3086_v20 = vld [vmem:[%s4007_s13 + $0x4] ss:$8 sps:$4 sm:$0xff]   ;;  %v3084_v58 = vld [vmem:[%s4007_s13] ss:$8 sps:$4 sm:$0xff]   ;;  %v3090_v59 = vld [vmem:[%s4007_s13 + $0x14] ss:$8 sps:$4 sm:$0xff]  }
 0x1ea   : > { %2636 = vmatprep.subr.bf16.mxu0 %v3072_v45  ;;  %2762 = vmatprep.subr.bf16.mxu1 %v3072_v45  ;;  %v3089_v36 = vld [vmem:[%s4007_s13 + $0x84] ss:$8 sps:$4 sm:$0xff]   ;;  %v3087_v39 = vld [vmem:[%s4007_s13 + $0x80] ss:$8 sps:$4 sm:$0xff]   ;;  %v3092_v38 = vld [vmem:[%s4007_s13 + $0x94] ss:$8 sps:$4 sm:$0xff]  }
 0x1eb   : > { %1994 = vmatprep.mubr.bf16.mxu0 %v3086_v20  ;;  %2058 = vmatprep.mubr.bf16.mxu1 %v3089_v36  ;;  %v3094_v63 = vld [vmem:[%s4007_s13 + $0x10] ss:$8 sps:$4 sm:$0xff]   ;;  %v3096_v11 = vld [vmem:[%s4007_s13 + $0x24] ss:$8 sps:$4 sm:$0xff]   ;;  %v3100_v37 = vld [vmem:[%s4007_s13 + $0x20] ss:$8 sps:$4 sm:$0xff]  }
 0x1ec   : > { %v3095_v12 = vld [vmem:[%s4007_s13 + $0x90] ss:$8 sps:$4 sm:$0xff]   ;;  %v3098_v16 = vld [vmem:[%s4007_s13 + $0xa4] ss:$8 sps:$4 sm:$0xff]   ;;  %v3101_v30 = vld [vmem:[%s4007_s13 + $0xa0] ss:$8 sps:$4 sm:$0xff]  }
 0x1ed   : > { %2637 = vmatpush3.bf16.msra.mxu0 %v3073_v3  ;;  %2770 = vmatpush3.bf16.msra.mxu1 %v3073_v3  ;;  %v3102_v33 = vld [vmem:[%s4007_s13 + $0x34] ss:$8 sps:$4 sm:$0xff]   ;;  %v3106_v9 = vld [vmem:[%s4007_s13 + $0x30] ss:$8 sps:$4 sm:$0xff]   ;;  %v3108_v27 = vld [vmem:[%s4007_s13 + $0x44] ss:$8 sps:$4 sm:$0xff]  }
 0x1ee   : > { %2638 = vmatprep.subr.bf16.mxu0 %v3074_v55  ;;  %2763 = vmatprep.subr.bf16.mxu1 %v3074_v55  ;;  %v3104_v42 = vld [vmem:[%s4007_s13 + $0xb4] ss:$8 sps:$4 sm:$0xff]   ;;  %v3107_v61 = vld [vmem:[%s4007_s13 + $0xb0] ss:$8 sps:$4 sm:$0xff]   ;;  %v3110_v52 = vld [vmem:[%s4007_s13 + $0xc4] ss:$8 sps:$4 sm:$0xff]  }
 0x1ef   : > { %v3112_v44 = vld [vmem:[%s4007_s13 + $0x40] ss:$8 sps:$4 sm:$0xff]   ;;  %v3114_v31 = vld [vmem:[%s4007_s13 + $0x54] ss:$8 sps:$4 sm:$0xff]   ;;  %v3118_v8 = vld [vmem:[%s4007_s13 + $0x50] ss:$8 sps:$4 sm:$0xff]  }
 0x1f0   : > { %v3113_v7 = vld [vmem:[%s4007_s13 + $0xc0] ss:$8 sps:$4 sm:$0xff]   ;;  %v3116_v57 = vld [vmem:[%s4007_s13 + $0xd4] ss:$8 sps:$4 sm:$0xff]   ;;  %v3119_v10 = vld [vmem:[%s4007_s13 + $0xd0] ss:$8 sps:$4 sm:$0xff]  }
 0x1f1   : > { %2639 = vmatpush3.bf16.msra.mxu0 %v3075_v46  ;;  %2771 = vmatpush3.bf16.msra.mxu1 %v3075_v46  ;;  %v3120_v17 = vld [vmem:[%s4007_s13 + $0x64] ss:$8 sps:$4 sm:$0xff]   ;;  %v3124_v21 = vld [vmem:[%s4007_s13 + $0x60] ss:$8 sps:$4 sm:$0xff]   ;;  %v3126_v50 = vld [vmem:[%s4007_s13 + $0x74] ss:$8 sps:$4 sm:$0xff]  }
 0x1f2   : > { %2640 = vmatprep.subr.bf16.mxu0 %v3076_v4  ;;  %2764 = vmatprep.subr.bf16.mxu1 %v3076_v4  ;;  %v3122_v19 = vld [vmem:[%s4007_s13 + $0xe4] ss:$8 sps:$4 sm:$0xff]   ;;  %v3125_v22 = vld [vmem:[%s4007_s13 + $0xe0] ss:$8 sps:$4 sm:$0xff]   ;;  %v3128_v24 = vld [vmem:[%s4007_s13 + $0xf4] ss:$8 sps:$4 sm:$0xff]  }
 0x1f3   : > { %v3130_v18 = vld [vmem:[%s4007_s13 + $0x70] ss:$8 sps:$4 sm:$0xff]   ;;  %v1643_v1 = vld [vmem:[#allocation2] sm:$0xff] }
 0x1f4   : > { %v3131_v25 = vld [vmem:[%s4007_s13 + $0xf0] ss:$8 sps:$4 sm:$0xff]   ;;  %v1660_v4 = vld [vmem:[#allocation2 + $0x40] sm:$0xff] }
 0x1f5   : > { %2641 = vmatpush3.bf16.msra.mxu0 %v3077_v47  ;;  %2772 = vmatpush3.bf16.msra.mxu1 %v3077_v47  ;;  %v1659_v60 = vld [vmem:[#allocation2 + $0x58] sm:$0xff] }
 0x1f6   : > { %2642 = vmatprep.subr.bf16.mxu0 %v3078_v40  ;;  %2765 = vmatprep.subr.bf16.mxu1 %v3078_v40  ;;  %v1644_v55 = vld [vmem:[#allocation2 + $0xd8] sm:$0xff] }
 0x1f9   : > { %2643 = vmatpush3.bf16.msra.mxu0 %v3079_v53  ;;  %2773 = vmatpush3.bf16.msra.mxu1 %v3079_v53 }
 0x1fa   : > { %2644 = vmatprep.subr.bf16.mxu0 %v3080_v26  ;;  %2766 = vmatprep.subr.bf16.mxu1 %v3080_v26 }
 0x1fd   : > { %2645 = vmatpush3.bf16.msra.mxu0 %v3081_v48  ;;  %2774 = vmatpush3.bf16.msra.mxu1 %v3081_v48 }
 0x1fe   : > { %2646 = vmatprep.subr.bf16.mxu0 %v3082_v54  ;;  %2767 = vmatprep.subr.bf16.mxu1 %v3082_v54  ;;  %v1645_v54 = vld [vmem:[#allocation2 + $0x18] sm:$0xff] }
 0x201   : > { %2647 = vmatpush3.bf16.msra.mxu0 %v3083_v56  ;;  %2775 = vmatpush3.bf16.msra.mxu1 %v3083_v56 }
 0x204   : > { %1995 = vmatmul.mubr.bf16.vlgmr.msra.gmra.mxu0 %v3084_v58  ;;  %2059 = vmatmul.mubr.bf16.vlgmr.msra.gmra.mxu1 %v3087_v39  ;;  %v1661_v58 = vld [vmem:[#allocation2 + $0xc8] sm:$0xff] }
 0x205   : > { %2002 = vmatprep.mubr.bf16.mxu0 %v3090_v59  ;;  %2066 = vmatprep.mubr.bf16.mxu1 %v3092_v38 }
 0x20c   : > { %2003 = vmatmul.mubr.bf16.gmra.mxu0 %v3094_v63  ;;  %2067 = vmatmul.mubr.bf16.gmra.mxu1 %v3095_v12 }
 0x20d   : > { %2010 = vmatprep.mubr.bf16.mxu0 %v3096_v11  ;;  %2074 = vmatprep.mubr.bf16.mxu1 %v3098_v16 }
 0x214   : > { %2011 = vmatmul.mubr.bf16.gmra.mxu0 %v3100_v37  ;;  %2075 = vmatmul.mubr.bf16.gmra.mxu1 %v3101_v30  ;;  %v1646_v37 = vld [vmem:[#allocation2 + $0x50] sm:$0xff] }
 0x215   : > { %2018 = vmatprep.mubr.bf16.mxu0 %v3102_v33  ;;  %2082 = vmatprep.mubr.bf16.mxu1 %v3104_v42  ;;  %v1662_v33 = vld [vmem:[#allocation2 + $0xe0] sm:$0xff] }
 0x21c   : > { %2019 = vmatmul.mubr.bf16.gmra.mxu0 %v3106_v9  ;;  %2083 = vmatmul.mubr.bf16.gmra.mxu1 %v3107_v61 }
 0x21d   : > { %2026 = vmatprep.mubr.bf16.mxu0 %v3108_v27  ;;  %2090 = vmatprep.mubr.bf16.mxu1 %v3110_v52 }
 0x224   : > { %2027 = vmatmul.mubr.bf16.gmra.mxu0 %v3112_v44  ;;  %2091 = vmatmul.mubr.bf16.gmra.mxu1 %v3113_v7 }
 0x225   : > { %2034 = vmatprep.mubr.bf16.mxu0 %v3114_v31  ;;  %2098 = vmatprep.mubr.bf16.mxu1 %v3116_v57  ;;  %v1647_v31 = vld [vmem:[#allocation2 + $0x68] sm:$0xff] }
 0x22c   : > { %2035 = vmatmul.mubr.bf16.gmra.mxu0 %v3118_v8  ;;  %2099 = vmatmul.mubr.bf16.gmra.mxu1 %v3119_v10  ;;  %v1663_v8 = vld [vmem:[#allocation2 + $0x90] sm:$0xff] }
 0x22d   : > { %2042 = vmatprep.mubr.bf16.mxu0 %v3120_v17  ;;  %2106 = vmatprep.mubr.bf16.mxu1 %v3122_v19 }
 0x234   : > { %2043 = vmatmul.mubr.bf16.gmra.mxu0 %v3124_v21  ;;  %2107 = vmatmul.mubr.bf16.gmra.mxu1 %v3125_v22 }
 0x235   : > { %2050 = vmatprep.mubr.bf16.mxu0 %v3126_v50  ;;  %2114 = vmatprep.mubr.bf16.mxu1 %v3128_v24 }
 0x23c   : > { %2051 = vmatmul.mubr.bf16.gmra.mxu0 %v3130_v18  ;;  %2115 = vmatmul.mubr.bf16.gmra.mxu1 %v3131_v25  ;;  %v1648_v18 = vld [vmem:[#allocation2 + $0x30] sm:$0xff] }
 0x2c4   : > { %v2648_v28 = vpop.f32.mrf.mxu0  ;;  %v2696_v15 = vpop.f32.mrf.mxu1 }
 0x2c6   : > { %v2649_v41 = vpop.f32.mrf.mxu0  ;;  %v2697_v32 = vpop.f32.mrf.mxu1 }
 0x2c7   : > { %v2650_v62 = vadd.f32 %v2649_v41, %v2648_v28  ;;  %v2698_v43 = vadd.f32 %v2697_v32, %v2696_v15  ;;  %v1664_v28 = vld [vmem:[#allocation2 + $0x70] sm:$0xff] }
 0x2c8   : > { %v2651_v34 = vpop.f32.mrf.mxu0  ;;  %v2699_v35 = vpop.f32.mrf.mxu1 }
 0x2c9   : > { %v2123_v29 = vadd.f32 %v2650_v62, %v1642_v6  ;;  %v2139_v49 = vadd.f32 %v2698_v43, %v1658_v13 }
 0x2ca   : > { %v2652_v51 = vpop.f32.mrf.mxu0  ;;  %v2700_v23 = vpop.f32.mrf.mxu1 }
 0x2cb   : > { %2155 = vst [vmem:[#allocation2 + $0xb0] sm:$0xff] %v2123_v29  ;;  %2171 = vst [vmem:[#allocation2 + $0x38] sm:$0xff] %v2139_v49  ;;  %v2653_v2 = vadd.f32 %v2652_v51, %v2651_v34  ;;  %v2701_v14 = vadd.f32 %v2700_v23, %v2699_v35  ;;  %v1649_v34 = vld [vmem:[#allocation2 + $0x48] sm:$0xff]  ;;  %v1665_v29 = vld [vmem:[#allocation2 + $0xc0] sm:$0xff] }
 0x2cc   : > { %v2654_v5 = vpop.f32.mrf.mxu0  ;;  %v2702_v0 = vpop.f32.mrf.mxu1 }
 0x2cd   : > { %v2124_v45 = vadd.f32 %v2653_v2, %v1643_v1  ;;  %v2140_v3 = vadd.f32 %v2701_v14, %v1659_v60 }
 0x2ce   : > { %v2655_v46 = vpop.f32.mrf.mxu0  ;;  %v2703_v47 = vpop.f32.mrf.mxu1 }
 0x2cf   : > { %2156 = vst [vmem:[#allocation2] sm:$0xff] %v2124_v45  ;;  %2172 = vst [vmem:[#allocation2 + $0x58] sm:$0xff] %v2140_v3  ;;  %v2656_v40 = vadd.f32 %v2655_v46, %v2654_v5  ;;  %v2704_v20 = vadd.f32 %v2703_v47, %v2702_v0  ;;  %v1650_v5 = vld [vmem:[#allocation2 + $0x80] sm:$0xff]  ;;  %v1666_v45 = vld [vmem:[#allocation2 + $0xa8] sm:$0xff] }
 0x2d0   : > { %v2657_v36 = vpop.f32.mrf.mxu0  ;;  %v2705_v53 = vpop.f32.mrf.mxu1 }
 0x2d1   : > { %v2125_v26 = vadd.f32 %v2656_v40, %v1644_v55  ;;  %v2141_v48 = vadd.f32 %v2704_v20, %v1660_v4 }
 0x2d2   : > { %v2658_v56 = vpop.f32.mrf.mxu0  ;;  %v2706_v39 = vpop.f32.mrf.mxu1 }
 0x2d3   : > { %2157 = vst [vmem:[#allocation2 + $0xd8] sm:$0xff] %v2125_v26  ;;  %2173 = vst [vmem:[#allocation2 + $0x40] sm:$0xff] %v2141_v48  ;;  %v2659_v59 = vadd.f32 %v2658_v56, %v2657_v36  ;;  %v2707_v38 = vadd.f32 %v2706_v39, %v2705_v53  ;;  %v1651_v36 = vld [vmem:[#allocation2 + $0x88] sm:$0xff]  ;;  %v1667_v26 = vld [vmem:[#allocation2 + $0xd0] sm:$0xff] }
 0x2d4   : > { %v2660_v63 = vpop.f32.mrf.mxu0  ;;  %v2708_v12 = vpop.f32.mrf.mxu1 }
 0x2d5   : > { %v2126_v11 = vadd.f32 %v2659_v59, %v1645_v54  ;;  %v2142_v16 = vadd.f32 %v2707_v38, %v1661_v58 }
 0x2d6   : > { %v2661_v30 = vpop.f32.mrf.mxu0  ;;  %v2709_v42 = vpop.f32.mrf.mxu1 }
 0x2d7   : > { %2158 = vst [vmem:[#allocation2 + $0x18] sm:$0xff] %v2126_v11  ;;  %2174 = vst [vmem:[#allocation2 + $0xc8] sm:$0xff] %v2142_v16  ;;  %v2662_v9 = vadd.f32 %v2661_v30, %v2660_v63  ;;  %v2710_v61 = vadd.f32 %v2709_v42, %v2708_v12  ;;  %v1652_v63 = vld [vmem:[#allocation2 + $0xe8] sm:$0xff]  ;;  %v1668_v11 = vld [vmem:[#allocation2 + $0x10] sm:$0xff] }
 0x2d8   : > { %v2663_v27 = vpop.f32.mrf.mxu0  ;;  %v2711_v52 = vpop.f32.mrf.mxu1 }
 0x2d9   : > { %v2127_v44 = vadd.f32 %v2662_v9, %v1646_v37  ;;  %v2143_v7 = vadd.f32 %v2710_v61, %v1662_v33 }
 0x2da   : > { %v2664_v57 = vpop.f32.mrf.mxu0  ;;  %v2712_v10 = vpop.f32.mrf.mxu1 }
 0x2db   : > { %2159 = vst [vmem:[#allocation2 + $0x50] sm:$0xff] %v2127_v44  ;;  %2175 = vst [vmem:[#allocation2 + $0xe0] sm:$0xff] %v2143_v7  ;;  %v2665_v17 = vadd.f32 %v2664_v57, %v2663_v27  ;;  %v2713_v19 = vadd.f32 %v2712_v10, %v2711_v52  ;;  %v1653_v27 = vld [vmem:[#allocation2 + $0xb8] sm:$0xff]  ;;  %v1669_v44 = vld [vmem:[#allocation2 + $0x28] sm:$0xff] }
 0x2dc   : > { %v2666_v21 = vpop.f32.mrf.mxu0  ;;  %v2714_v22 = vpop.f32.mrf.mxu1 }
 0x2dd   : > { %v2128_v50 = vadd.f32 %v2665_v17, %v1647_v31  ;;  %v2144_v24 = vadd.f32 %v2713_v19, %v1663_v8 }
 0x2de   : > { %v2667_v25 = vpop.f32.mrf.mxu0  ;;  %v2715_v15 = vpop.f32.mrf.mxu1 }
 0x2df   : > { %2160 = vst [vmem:[#allocation2 + $0x68] sm:$0xff] %v2128_v50  ;;  %2176 = vst [vmem:[#allocation2 + $0x90] sm:$0xff] %v2144_v24  ;;  %v2668_v6 = vadd.f32 %v2667_v25, %v2666_v21  ;;  %v2716_v41 = vadd.f32 %v2715_v15, %v2714_v22  ;;  %v1654_v21 = vld [vmem:[#allocation2 + $0x60] sm:$0xff] }
 0x2e0   : > { %v2669_v13 = vpop.f32.mrf.mxu0  ;;  %v2717_v32 = vpop.f32.mrf.mxu1  ;;  %v1670_v50 = vld [vmem:[#allocation2 + $0xa0] sm:$0xff] }
 0x2e1   : > { %v2129_v62 = vadd.f32 %v2668_v6, %v1648_v18  ;;  %v2145_v43 = vadd.f32 %v2716_v41, %v1664_v28 }
 0x2e2   : > { %v2670_v35 = vpop.f32.mrf.mxu0  ;;  %v2718_v49 = vpop.f32.mrf.mxu1 }
 0x2e3   : > { %2161 = vst [vmem:[#allocation2 + $0x30] sm:$0xff] %v2129_v62  ;;  %2177 = vst [vmem:[#allocation2 + $0x70] sm:$0xff] %v2145_v43  ;;  %v2671_v1 = vadd.f32 %v2670_v35, %v2669_v13  ;;  %v2719_v51 = vadd.f32 %v2718_v49, %v2717_v32  ;;  %v1655_v13 = vld [vmem:[#allocation2 + $0xf0] sm:$0xff]  ;;  %v1671_v62 = vld [vmem:[#allocation2 + $0xf8] sm:$0xff] }
 0x2e4   : > { %v2672_v60 = vpop.f32.mrf.mxu0  ;;  %v2720_v23 = vpop.f32.mrf.mxu1 }
 0x2e5   : > { %v2130_v2 = vadd.f32 %v2671_v1, %v1649_v34  ;;  %v2146_v14 = vadd.f32 %v2719_v51, %v1665_v29 }
 0x2e6   : > { %v2673_v0 = vpop.f32.mrf.mxu0  ;;  %v2721_v3 = vpop.f32.mrf.mxu1 }
 0x2e7   : > { %2162 = vst [vmem:[#allocation2 + $0x48] sm:$0xff] %v2130_v2  ;;  %2178 = vst [vmem:[#allocation2 + $0xc0] sm:$0xff] %v2146_v14  ;;  %v2674_v55 = vadd.f32 %v2673_v0, %v2672_v60  ;;  %v2722_v46 = vadd.f32 %v2721_v3, %v2720_v23  ;;  %v1656_v60 = vld [vmem:[#allocation2 + $0x8] sm:$0xff]  ;;  %v1672_v2 = vld [vmem:[#allocation2 + $0x20] sm:$0xff] }
 0x2e8   : > { %v2675_v4 = vpop.f32.mrf.mxu0  ;;  %v2723_v47 = vpop.f32.mrf.mxu1 }
 0x2e9   : > { %v2131_v40 = vadd.f32 %v2674_v55, %v1650_v5  ;;  %v2147_v20 = vadd.f32 %v2722_v46, %v1666_v45 }
 0x2ea   : > { %v2676_v53 = vpop.f32.mrf.mxu0  ;;  %v2724_v48 = vpop.f32.mrf.mxu1 }
 0x2eb   : > { %2163 = vst [vmem:[#allocation2 + $0x80] sm:$0xff] %v2131_v40  ;;  %2179 = vst [vmem:[#allocation2 + $0xa8] sm:$0xff] %v2147_v20  ;;  %v2677_v54 = vadd.f32 %v2676_v53, %v2675_v4  ;;  %v2725_v56 = vadd.f32 %v2724_v48, %v2723_v47  ;;  %v1657_v4 = vld [vmem:[#allocation2 + $0x78] sm:$0xff] }
 0x2ec   : > { %v2678_v58 = vpop.f32.mrf.mxu0  ;;  %v2726_v39 = vpop.f32.mrf.mxu1  ;;  %v1673_v40 = vld [vmem:[#allocation2 + $0x98] sm:$0xff] }
 0x2ed   : > { %v2132_v59 = vadd.f32 %v2677_v54, %v1651_v36  ;;  %v2148_v38 = vadd.f32 %v2725_v56, %v1667_v26 }
 0x2ee   : > { %v2679_v12 = vpop.f32.mrf.mxu0  ;;  %v2727_v16 = vpop.f32.mrf.mxu1 }
 0x2ef   : > { %2164 = vst [vmem:[#allocation2 + $0x88] sm:$0xff] %v2132_v59  ;;  %2180 = vst [vmem:[#allocation2 + $0xd0] sm:$0xff] %v2148_v38  ;;  %v2680_v37 = vadd.f32 %v2679_v12, %v2678_v58  ;;  %v2728_v30 = vadd.f32 %v2727_v16, %v2726_v39 }
 0x2f0   : > { %v2681_v33 = vpop.f32.mrf.mxu0  ;;  %v2729_v42 = vpop.f32.mrf.mxu1 }
 0x2f1   : > { %v2133_v9 = vadd.f32 %v2680_v37, %v1652_v63  ;;  %v2149_v61 = vadd.f32 %v2728_v30, %v1668_v11 }
 0x2f2   : > { %v2682_v52 = vpop.f32.mrf.mxu0  ;;  %v2730_v7 = vpop.f32.mrf.mxu1 }
 0x2f3   : > { %2165 = vst [vmem:[#allocation2 + $0xe8] sm:$0xff] %v2133_v9  ;;  %2181 = vst [vmem:[#allocation2 + $0x10] sm:$0xff] %v2149_v61  ;;  %v2683_v31 = vadd.f32 %v2682_v52, %v2681_v33  ;;  %v2731_v57 = vadd.f32 %v2730_v7, %v2729_v42 }
 0x2f4   : > { %v2684_v8 = vpop.f32.mrf.mxu0  ;;  %v2732_v10 = vpop.f32.mrf.mxu1 }
 0x2f5   : > { %v2134_v17 = vadd.f32 %v2683_v31, %v1653_v27  ;;  %v2150_v19 = vadd.f32 %v2731_v57, %v1669_v44 }
 0x2f6   : > { %v2685_v22 = vpop.f32.mrf.mxu0  ;;  %v2733_v24 = vpop.f32.mrf.mxu1 }
 0x2f7   : > { %2166 = vst [vmem:[#allocation2 + $0xb8] sm:$0xff] %v2134_v17  ;;  %2182 = vst [vmem:[#allocation2 + $0x28] sm:$0xff] %v2150_v19  ;;  %v2686_v18 = vadd.f32 %v2685_v22, %v2684_v8  ;;  %v2734_v25 = vadd.f32 %v2733_v24, %v2732_v10 }
 0x2f8   : > { %v2687_v28 = vpop.f32.mrf.mxu0  ;;  %v2735_v15 = vpop.f32.mrf.mxu1 }
 0x2f9   : > { %v2135_v6 = vadd.f32 %v2686_v18, %v1654_v21  ;;  %v2151_v41 = vadd.f32 %v2734_v25, %v1670_v50 }
 0x2fa   : > { %v2688_v32 = vpop.f32.mrf.mxu0  ;;  %v2736_v43 = vpop.f32.mrf.mxu1 }
 0x2fb   : > { %2167 = vst [vmem:[#allocation2 + $0x60] sm:$0xff] %v2135_v6  ;;  %2183 = vst [vmem:[#allocation2 + $0xa0] sm:$0xff] %v2151_v41  ;;  %v2689_v34 = vadd.f32 %v2688_v32, %v2687_v28  ;;  %v2737_v35 = vadd.f32 %v2736_v43, %v2735_v15 }
 0x2fc   : > { %v2690_v29 = vpop.f32.mrf.mxu0  ;;  %v2738_v49 = vpop.f32.mrf.mxu1 }
 0x2fd   : > { %v2136_v1 = vadd.f32 %v2689_v34, %v1655_v13  ;;  %v2152_v51 = vadd.f32 %v2737_v35, %v1671_v62 }
 0x2fe   : > { %v2691_v23 = vpop.f32.mrf.mxu0  ;;  %v2739_v14 = vpop.f32.mrf.mxu1 }
 0x2ff   : > { %2168 = vst [vmem:[#allocation2 + $0xf0] sm:$0xff] %v2136_v1  ;;  %2184 = vst [vmem:[#allocation2 + $0xf8] sm:$0xff] %v2152_v51  ;;  %v2692_v5 = vadd.f32 %v2691_v23, %v2690_v29  ;;  %v2740_v0 = vadd.f32 %v2739_v14, %v2738_v49 }
 0x300   : > { %v2693_v45 = vpop.f32.mrf.mxu0  ;;  %v2741_v3 = vpop.f32.mrf.mxu1 }
 0x301   : > { %v2137_v55 = vadd.f32 %v2692_v5, %v1656_v60  ;;  %v2153_v46 = vadd.f32 %v2740_v0, %v1672_v2 }
 0x302   : > { %v2694_v47 = vpop.f32.mrf.mxu0  ;;  %v2742_v20 = vpop.f32.mrf.mxu1 }
 0x303   : > { %2169 = vst [vmem:[#allocation2 + $0x8] sm:$0xff] %v2137_v55  ;;  %2185 = vst [vmem:[#allocation2 + $0x20] sm:$0xff] %v2153_v46  ;;  %v2695_v36 = vadd.f32 %v2694_v47, %v2693_v45  ;;  %v2743_v53 = vadd.f32 %v2742_v20, %v2741_v3  ;;  %2190 = sbr.rel (%p2587_p12) target bundleno = 795 (0x31b), region = 131 }
 0x305   : > { %v2138_v26 = vadd.f32 %v2695_v36, %v1657_v4  ;;  %v2154_v48 = vadd.f32 %v2743_v53, %v1673_v40 }
 0x307   : > { %2170 = vst [vmem:[#allocation2 + $0x78] sm:$0xff] %v2138_v26  ;;  %2186 = vst [vmem:[#allocation2 + $0x98] sm:$0xff] %v2154_v48 }
 0x308   : > { %v2191_v54 = vld [vmem:[#allocation2 + $0xb0] sm:$0xff]  ;;  %v4052_v56 = vld [vmem:[%s588_s24] ss:$0 sm:$0xff]  ;;  %v2193_v38 = vld [vmem:[#allocation2 + $0xd8] sm:$0xff] }
 0x309   : > { %v2192_v58 = vld [vmem:[#allocation2] sm:$0xff]  ;;  %v2230_v39 = vadd.f32 %v4052_v56, %v2191_v54  ;;  %v2194_v63 = vld [vmem:[#allocation2 + $0x18] sm:$0xff]  ;;  %v2195_v12 = vld [vmem:[#allocation2 + $0x50] sm:$0xff]  ;;  %v2232_v11 = vadd.f32 %v4052_v56, %v2193_v38 }
 0x30a   : > { %v2231_v59 = vadd.f32 %v4052_v56, %v2192_v58  ;;  %v2233_v16 = vadd.f32 %v4052_v56, %v2194_v63  ;;  %v2234_v37 = vadd.f32 %v4052_v56, %v2195_v12  ;;  %v2196_v30 = vld [vmem:[#allocation2 + $0x68] sm:$0xff]  ;;  %v2197_v33 = vld [vmem:[#allocation2 + $0x30] sm:$0xff]  ;;  %v2199_v52 = vld [vmem:[#allocation2 + $0x80] sm:$0xff] }
 0x30b   : > { %v2198_v42 = vld [vmem:[#allocation2 + $0x48] sm:$0xff]  ;;  %2262 = vst [vmem:[%s3578_s16] sm:$0xff] %v2230_v39  ;;  %v2235_v9 = vadd.f32 %v4052_v56, %v2196_v30  ;;  %v2236_v61 = vadd.f32 %v4052_v56, %v2197_v33  ;;  %2264 = vst [vmem:[%s3578_s16 + $0x10] sm:$0xff] %v2232_v11  ;;  %v2238_v31 = vadd.f32 %v4052_v56, %v2199_v52  ;;  %v2202_v10 = vld [vmem:[#allocation2 + $0xb8] sm:$0xff] }
 0x30c   : > { %2263 = vst [vmem:[%s3578_s16 + $0x8] sm:$0xff] %v2231_v59  ;;  %v2237_v27 = vadd.f32 %v4052_v56, %v2198_v42  ;;  %v2200_v44 = vld [vmem:[#allocation2 + $0x88] sm:$0xff]  ;;  %2265 = vst [vmem:[%s3578_s16 + $0x18] sm:$0xff] %v2233_v16  ;;  %v2203_v17 = vld [vmem:[#allocation2 + $0x60] sm:$0xff]  ;;  %v2241_v21 = vadd.f32 %v4052_v56, %v2202_v10 }
 0x30d   : > { %v2201_v7 = vld [vmem:[#allocation2 + $0xe8] sm:$0xff]  ;;  %2266 = vst [vmem:[%s3578_s16 + $0x20] sm:$0xff] %v2234_v37  ;;  %v2239_v57 = vadd.f32 %v4052_v56, %v2200_v44  ;;  %v2204_v19 = vld [vmem:[#allocation2 + $0xf0] sm:$0xff]  ;;  %2267 = vst [vmem:[%s3578_s16 + $0x28] sm:$0xff] %v2235_v9  ;;  %v2242_v22 = vadd.f32 %v4052_v56, %v2203_v17 }
 0x30e   : > { %v2240_v8 = vadd.f32 %v4052_v56, %v2201_v7  ;;  %2268 = vst [vmem:[%s3578_s16 + $0x30] sm:$0xff] %v2236_v61  ;;  %2269 = vst [vmem:[%s3578_s16 + $0x38] sm:$0xff] %v2237_v27  ;;  %v2243_v50 = vadd.f32 %v4052_v56, %v2204_v19  ;;  %v2205_v24 = vld [vmem:[#allocation2 + $0x8] sm:$0xff]  ;;  %v2206_v18 = vld [vmem:[#allocation2 + $0x78] sm:$0xff] }
 0x30f   : > { %v2207_v25 = vld [vmem:[#allocation2 + $0x38] sm:$0xff]  ;;  %2270 = vst [vmem:[%s3578_s16 + $0x40] sm:$0xff] %v2238_v31  ;;  %2271 = vst [vmem:[%s3578_s16 + $0x48] sm:$0xff] %v2239_v57  ;;  %v2244_v28 = vadd.f32 %v4052_v56, %v2205_v24  ;;  %v2245_v15 = vadd.f32 %v4052_v56, %v2206_v18  ;;  %v2209_v13 = vld [vmem:[#allocation2 + $0x40] sm:$0xff] }
 0x310   : > { %2272 = vst [vmem:[%s3578_s16 + $0x50] sm:$0xff] %v2240_v8  ;;  %v2246_v6 = vadd.f32 %v4052_v56, %v2207_v25  ;;  %v2208_v41 = vld [vmem:[#allocation2 + $0x58] sm:$0xff]  ;;  %v2210_v32 = vld [vmem:[#allocation2 + $0xc8] sm:$0xff]  ;;  %2273 = vst [vmem:[%s3578_s16 + $0x58] sm:$0xff] %v2241_v21  ;;  %v2248_v43 = vadd.f32 %v4052_v56, %v2209_v13 }
 0x311   : > { %2274 = vst [vmem:[%s3578_s16 + $0x60] sm:$0xff] %v2242_v22  ;;  %2275 = vst [vmem:[%s3578_s16 + $0x68] sm:$0xff] %v2243_v50  ;;  %v2247_v62 = vadd.f32 %v4052_v56, %v2208_v41  ;;  %v2249_v34 = vadd.f32 %v4052_v56, %v2210_v32  ;;  %v2211_v35 = vld [vmem:[#allocation2 + $0xe0] sm:$0xff]  ;;  %v2212_v29 = vld [vmem:[#allocation2 + $0x90] sm:$0xff] }
 0x312   : > { %v2213_v49 = vld [vmem:[#allocation2 + $0x70] sm:$0xff]  ;;  %2276 = vst [vmem:[%s3578_s16 + $0x70] sm:$0xff] %v2244_v28  ;;  %2277 = vst [vmem:[%s3578_s16 + $0x78] sm:$0xff] %v2245_v15  ;;  %v2250_v1 = vadd.f32 %v4052_v56, %v2211_v35  ;;  %v2251_v51 = vadd.f32 %v4052_v56, %v2212_v29  ;;  %v2214_v23 = vld [vmem:[#allocation2 + $0xc0] sm:$0xff] }
 0x313   : > { %2278 = vst [vmem:[%s3578_s16 + $0x80] sm:$0xff] %v2246_v6  ;;  %v2252_v60 = vadd.f32 %v4052_v56, %v2213_v49  ;;  %v2215_v2 = vld [vmem:[#allocation2 + $0xa8] sm:$0xff]  ;;  %v2216_v14 = vld [vmem:[#allocation2 + $0xd0] sm:$0xff]  ;;  %2279 = vst [vmem:[%s3578_s16 + $0x88] sm:$0xff] %v2247_v62  ;;  %v2253_v5 = vadd.f32 %v4052_v56, %v2214_v23 }
 0x314   : > { %2280 = vst [vmem:[%s3578_s16 + $0x90] sm:$0xff] %v2248_v43  ;;  %2281 = vst [vmem:[%s3578_s16 + $0x98] sm:$0xff] %v2249_v34  ;;  %v2254_v0 = vadd.f32 %v4052_v56, %v2215_v2  ;;  %v2255_v45 = vadd.f32 %v4052_v56, %v2216_v14  ;;  %v2217_v3 = vld [vmem:[#allocation2 + $0x10] sm:$0xff]  ;;  %v2218_v55 = vld [vmem:[#allocation2 + $0x28] sm:$0xff] }
 0x315   : > { %v2219_v46 = vld [vmem:[#allocation2 + $0xa0] sm:$0xff]  ;;  %2282 = vst [vmem:[%s3578_s16 + $0xa0] sm:$0xff] %v2250_v1  ;;  %2283 = vst [vmem:[%s3578_s16 + $0xa8] sm:$0xff] %v2251_v51  ;;  %v2256_v4 = vadd.f32 %v4052_v56, %v2217_v3  ;;  %v2257_v47 = vadd.f32 %v4052_v56, %v2218_v55  ;;  %v2220_v20 = vld [vmem:[#allocation2 + $0xf8] sm:$0xff] }
 0x316   : > { %2284 = vst [vmem:[%s3578_s16 + $0xb0] sm:$0xff] %v2252_v60  ;;  %v2258_v40 = vadd.f32 %v4052_v56, %v2219_v46  ;;  %v2221_v36 = vld [vmem:[#allocation2 + $0x20] sm:$0xff]  ;;  %v2222_v53 = vld [vmem:[#allocation2 + $0x98] sm:$0xff]  ;;  %2285 = vst [vmem:[%s3578_s16 + $0xb8] sm:$0xff] %v2253_v5  ;;  %v2259_v26 = vadd.f32 %v4052_v56, %v2220_v20 }
 0x317   : > { %2286 = vst [vmem:[%s3578_s16 + $0xc0] sm:$0xff] %v2254_v0  ;;  %2287 = vst [vmem:[%s3578_s16 + $0xc8] sm:$0xff] %v2255_v45  ;;  %v2260_v48 = vadd.f32 %v4052_v56, %v2221_v36  ;;  %v2261_v54 = vadd.f32 %v4052_v56, %v2222_v53 }
 0x318   : > { %2288 = vst [vmem:[%s3578_s16 + $0xd0] sm:$0xff] %v2256_v4  ;;  %2289 = vst [vmem:[%s3578_s16 + $0xd8] sm:$0xff] %v2257_v47 }
 0x319   : > { %2290 = vst [vmem:[%s3578_s16 + $0xe0] sm:$0xff] %v2258_v40  ;;  %2291 = vst [vmem:[%s3578_s16 + $0xe8] sm:$0xff] %v2259_v26 }
 0x31a   : > { %2292 = vst [vmem:[%s3578_s16 + $0xf0] sm:$0xff] %v2260_v48  ;;  %2293 = vst [vmem:[%s3578_s16 + $0xf8] sm:$0xff] %v2261_v54 }
 0x31b PF: > { %s2631_s24 = sshll.u32 %s3256_s27, 6  ;;  %s2310_s17 = sshll.u32 %s3578_s16, 4  ;;  %s4121_s17 = int_to_ptr.vmem [resolvable:$true] %s2310_s17 }
 0x31c   : > { %s2307_s25 = sadd.s32 %s3252_s26, %s2631_s24  ;;  %s4246_s1 = sld [smem:[#allocation22_spill]] }
 0x31d   : > { %s2592_s7 = sshll.u32 %s2307_s25, 7  ;;  %s4247_s9 = sand.u32 1, %s3224_s19  }
 0x31e   : > { %s4130_s28 = scalar_lea.sflag [#allocation7], %s4247_s9  ;;  %s3132_s29 = scalar_lea.vmem %s4121_s17, 4096 }
 0x31f   : > { %p3133_p13 = scmp.ne.s32.totalorder %s4121_s17, %s3132_s29  ;;  %s3276_s26 = smov [#allocation6]  }
 0x320   : > { %s3136_s27 = sshll.u32 %s3276_s26, 4  ;;  %s3137_s27 = int_to_ptr.vmem [resolvable:$false] %s3136_s27 }
 0x321   : > { %p3134_p0 = pnand %p3133_p13, %p3436_p1  ;;  %s3138_s16 = scalar_lea.vmem %s3137_s27, 8192 }
 0x322   : > { %s4126_s11 = scalar_lea.hbm %s4246_s1, %s2592_s7  ;;  %p3139_p4 = scmp.lt.s32.totalorder %s4121_s17, %s3137_s27 }
 0x323   : > { %p3135_p3 = pneg %p3134_p0  ;;  %p3140_p5 = scmp.lt.s32.totalorder %s3138_s16, %s3132_s29 }
 0x325   : > { %p3141_p6 = por %p3140_p5, %p3139_p4 }
 0x327   : > { %p3142_p7 = pnand %p3141_p6, %p3135_p3 }
 0x329   : > { %3145 = shalt.err (!%p3142_p7)
}
 0x32a   : > { %s3146_s30 = scalar_lea.hbm %s4126_s11, 4096  ;;  %s3150_s14 = scalar_lea.hbm %s4246_s1, 16384 }
 0x32b   : > { %p3147_p8 = scmp.ne.s32.totalorder %s4126_s11, %s3146_s30  ;;  %p3151_p11 = scmp.lt.s32.totalorder %s4126_s11, %s4246_s1 }
 0x32c   : > { %p3152_p12 = scmp.lt.s32.totalorder %s3150_s14, %s3146_s30 }
 0x32d   : > { %p3148_p9 = pnand %p3147_p8, %p3436_p1 }
 0x32e   : > { %p3153_p13 = por %p3152_p12, %p3151_p11 }
 0x32f   : > { %p3149_p10 = pneg %p3148_p9 }
 0x331   : > { %p3154_p0 = pnand %p3153_p13, %p3149_p10 }
 0x333   : > { %3157 = shalt.err (!%p3154_p0)
}
 0x334   : > { %s3277_s15 = smov 128   ;;  %s3278_s5 = smov 256  }
 0x335   : > { %s3279_s24 = smov 8  }
 0x336   : > { %2776 = dma.vmem_to_hbm [thread:$0]  (%p3436_p1), %s4121_s17, 4096, %s4126_s11, %s4130_s28, %s3277_s15, %s3278_s5, %s3279_s24  }
 0x337 PF: > { %p2782_p3 = scmp.ge.s32.totalorder %s3272_s6, 2  ;;  %s2325_s25 = sand.u32 1, %s3220_s18  }
 0x338   : > { %s2326_s7 = scalar_lea.sflag [#allocation7], %s2325_s25 }
 0x339   : > { %p2779_p4 = pnand %p2782_p3, %p3440_p2 }
 0x33b   : > { %p2780_p5 = pneg %p2779_p4 }
 0x33d   : > { %3215 = dma.done.wait (%p2780_p5), %s2326_s7, 4096  }
 0x33e   : > { %3217 = vsyncadd (%p2780_p5), %s2326_s7, 4294963200  ;;  %s18_s6 = sadd.s32 1, %s3272_s6   ;;  %s4249_s8 = sld [smem:[#allocation17_spill]] }
 0x33f   : > { %p4158_p6 = scmp.ge.s32.totalorder %s18_s6, 10   ;;  %s4250_s23 = sld [smem:[#allocation9_spill]] }
 0x340   : > { %s4251_s24 = sld [smem:[#allocation15_spill]]  ;;  %s4259_s18 = smov %s3224_s19 }
 0x341   : > { %s4252_s25 = sld [smem:[#allocation10_spill]]  ;;  %s4260_s19 = smov %s3228_s20 }
 0x342   : > { %s4253_s26 = sld [smem:[#allocation11_spill]]  ;;  %s4261_s20 = smov %s3434_s10 }
 0x343   : > { %s4254_s27 = sld [smem:[#allocation12_spill]]  ;;  %s4262_s21 = smov %s3236_s22 }
 0x344   : > { %s4255_s28 = sld [smem:[#allocation13_spill]]  ;;  %s4263_s22 = smov %s4249_s8 }
 0x345   : > { %s4256_s29 = sld [smem:[#allocation14_spill]]  ;;  %17 = sbr.rel (!%p4158_p6) target bundleno = 14 (0xe), region = 190 }
 0x346   : > { %s4257_s30 = sld [smem:[#allocation16_spill]] }
 0x34a   :  { %2331 = vsyncpa [#allocation7], 1 }
 0x34b   :  { %2333 = vsyncpa [#allocation7 + $0x1], 1 }

</bundles_post_ra>
